<compile_context>
chip_gen: v7x
topology: tpu7x:2x2x1
jax: 0.10.0
libtpu: 0.0.40
codegen_flags: <defaults>
</compile_context>

<pallas_src>
import jax
import jax.numpy as jnp
from jax.experimental import pallas as pl
from jax.experimental.pallas import tpu as pltpu


def _round_up(x, m):
    return (x + m - 1) // m * m


def textcnn_kernel(idx_ref, pt_ref, wl_ref, bl_ref, out_ref):
    TB, L = idx_ref.shape
    Vp = pt_ref.shape[0]
    Cp = pt_ref.shape[1] // 3

    pt = pt_ref[...]                                   # (Vp, 3*Cp) VMEM-resident table
    idx = idx_ref[...]                                 # (TB, L) int32 token ids
    vocab_iota = jax.lax.broadcasted_iota(jnp.int32, (TB, Vp), 1)

    # Running maxima.  Initializing at 0 is the ReLU floor:
    #   max_l relu(x_l) == max(0, max_l x_l)   (relu is monotone).
    p1 = jnp.zeros((TB, Cp), jnp.float32)              # k=1 branch
    p2 = jnp.zeros((TB, Cp), jnp.float32)              # k=2 branch
    prev_t0 = jnp.zeros((TB, Cp), jnp.float32)

    for l in range(L):                                 # L is small & static; unrolled
        # Lane-dense gather of PT rows for the tokens at position l (one-hot @ PT on MXU).
        one_hot = (idx[:, l:l + 1] == vocab_iota).astype(pt.dtype)        # (TB, Vp)
        row = jnp.dot(one_hot, pt, preferred_element_type=jnp.float32)    # (TB, 3*Cp)
        a = row[:, :Cp]               # k=1 tap   (b1 folded into PT)
        t0 = row[:, Cp:2 * Cp]        # k=2 tap0  (b2 folded into PT)
        t1 = row[:, 2 * Cp:]          # k=2 tap1
        p1 = jnp.maximum(p1, a)
        if l > 0:
            p2 = jnp.maximum(p2, prev_t0 + t1)         # conv k=2 at position l-1
        prev_t0 = t0

    # ---- dropout (identity at inference) -> fused Linear -> log_softmax ----
    # TODO(synk): nn.Dropout(p=0.2) is only active in training mode; identity here.
    feat = jnp.concatenate([p1, p2], axis=-1)                              # (TB, 2*Cp)
    logits = (jnp.dot(feat, wl_ref[...], preferred_element_type=jnp.float32)
              + bl_ref[...])                                               # (TB, Op)

    m = jnp.max(logits, axis=-1, keepdims=True)
    shifted = logits - m
    lse = jnp.log(jnp.sum(jnp.exp(shifted), axis=-1, keepdims=True))
    out_ref[...] = shifted - lse


def textcnn_forward(input_seq, emb_table, w1, b1, w2a, w2b, b2, wl, bl,
                    *, block_b=256, table_dtype=jnp.float32):
    """input_seq: (B, L) int32; returns (B, O) float32 log-probabilities.

    table_dtype=jnp.bfloat16 halves the resident table's VMEM footprint (accumulation stays
    f32 in-kernel); the default f32 matches the PyTorch reference closely.
    """
    B, L = input_seq.shape
    V, E = emb_table.shape
    C = w1.shape[1]
    O = wl.shape[1]

    Cp = _round_up(C, 128)        # lane-dense channel width
    Op = _round_up(O, 128)        # lane-dense output width
    Vp = _round_up(V, 128)        # lane-dense one-hot / table rows

    f32 = jnp.float32

    # --- Projected token table:  PT[v] = [emb@w1 + b1 | emb@w2a + b2 | emb@w2b] ---
    # (conv biases folded in: b1 once per k=1 position, b2 once per k=2 position via tap0).
    def pad_c(w):
        return jnp.pad(w.astype(f32), ((0, 0), (0, Cp - C)))
    wf = jnp.concatenate([pad_c(w1), pad_c(w2a), pad_c(w2b)], axis=1)        # (E, 3*Cp)
    pt = jnp.dot(emb_table.astype(f32), wf, precision="highest")             # (V, 3*Cp)
    b1p = jnp.pad(b1.astype(f32).reshape(1, -1), ((0, 0), (0, Cp - C)))
    b2p = jnp.pad(b2.astype(f32).reshape(1, -1), ((0, 0), (0, Cp - C)))
    bias_row = jnp.concatenate([b1p, b2p, jnp.zeros((1, Cp), f32)], axis=1)  # (1, 3*Cp)
    pt = jnp.pad(pt + bias_row, ((0, Vp - V), (0, 0))).astype(table_dtype)   # (Vp, 3*Cp)
    # TODO(synk): a full GloVe vocabulary (~400k rows) would not fit VMEM; that case needs
    # an HBM-resident table with an in-kernel DMA gather instead of this resident block.

    # --- Fused linear weight (2*Cp, Op): rows [0,C) = k=1 branch, [Cp,Cp+C) = k=2 branch ---
    wl_p = jnp.zeros((2 * Cp, Op), f32)
    wl_p = wl_p.at[:C, :O].set(wl[:C].astype(f32))
    wl_p = wl_p.at[Cp:Cp + C, :O].set(wl[C:].astype(f32))
    # Padded output columns carry a huge negative bias so log_softmax ignores them.
    bl_p = jnp.pad(bl.astype(f32).reshape(1, -1), ((0, 0), (0, Op - O)),
                   constant_values=-1e30)                                    # (1, Op)

    # --- Batch tiling: multiple-of-8 tile; prefer >=2 grid steps (v7x megacore) ---
    rows = _round_up(B, 8)
    TB = min(_round_up(block_b, 8), rows)
    if rows <= TB and rows >= 16:
        TB = _round_up((rows + 1) // 2, 8)
    B_pad = _round_up(B, TB)

    idx = jnp.pad(input_seq.astype(jnp.int32), ((0, B_pad - B), (0, 0)))     # (B_pad, L)

    full2 = lambda b: (0, 0)
    out = pl.pallas_call(
        textcnn_kernel,
        out_shape=jax.ShapeDtypeStruct((B_pad, Op), jnp.float32),
        grid_spec=pltpu.PrefetchScalarGridSpec(
            num_scalar_prefetch=0,
            grid=(B_pad // TB,),
            in_specs=[
                pl.BlockSpec((TB, L), lambda b: (b, 0)),   # token ids (only per-row HBM read)
                pl.BlockSpec((Vp, 3 * Cp), full2),         # resident projected table
                pl.BlockSpec((2 * Cp, Op), full2),         # fused linear weight
                pl.BlockSpec((1, Op), full2),              # linear bias (-1e30 padded)
            ],
            out_specs=pl.BlockSpec((TB, Op), lambda b: (b, 0)),
        ),
        compiler_params=pltpu.CompilerParams(
            dimension_semantics=("parallel",),
            vmem_limit_bytes=32 * 1024 * 1024),
    )(idx, pt, wl_p, bl_p)

    return out[:B, :O]


def reference_forward(input_seq, emb_table, w1, b1, w2a, w2b, b2, wl, bl):
    hp = "highest"
    emb = jnp.take(emb_table, input_seq, axis=0).astype(jnp.float32)     # (B, L, E)
    h1 = jnp.maximum(jnp.einsum("ble,ec->blc", emb, w1, precision=hp) + b1, 0.0)
    p1 = jnp.max(h1, axis=1)                                             # (B, C)
    h2 = jnp.maximum(jnp.einsum("ble,ec->blc", emb[:, :-1], w2a, precision=hp)
                     + jnp.einsum("ble,ec->blc", emb[:, 1:], w2b, precision=hp) + b2, 0.0)
    p2 = jnp.max(h2, axis=1)                                             # (B, C)
    feat = jnp.concatenate([p1, p2], axis=1)
    logits = jnp.dot(feat, wl, precision=hp) + bl
    return jax.nn.log_softmax(logits, axis=-1)


if __name__ == "__main__":
    # Small, deterministic config consistent with the module:
    #   conv_config = {'num_channels': 50, 'kernel_sizes': [1, 2]}, output_size = 2
    VOCAB, E = 100, 32          # embedding table (weights_matrix) shape
    B, L = 2, 16                # batch, sequence length
    C = 50                      # num_channels
    O = 2                       # output_size

    key = jax.random.PRNGKey(0)
    k_emb, k_w1, k_b1, k_w2, k_b2, k_wl, k_bl, k_in = jax.random.split(key, 8)

    emb_table = jax.random.normal(k_emb, (VOCAB, E), dtype=jnp.float32) * 0.1
    # Conv1d(E, C, k=1).weight is (C, E, 1) in torch; store transposed as (E, C).
    w1 = jax.random.normal(k_w1, (E, C), dtype=jnp.float32) * 0.05
    b1 = jax.random.normal(k_b1, (1, C), dtype=jnp.float32) * 0.05
    # Conv1d(E, C, k=2).weight is (C, E, 2); split into the two taps, transposed.
    w2 = jax.random.normal(k_w2, (2, E, C), dtype=jnp.float32) * 0.05
    w2a, w2b = w2[0], w2[1]
    b2 = jax.random.normal(k_b2, (1, C), dtype=jnp.float32) * 0.05
    # Linear(2C, O).weight is (O, 2C); store transposed as (2C, O).
    wl = jax.random.normal(k_wl, (2 * C, O), dtype=jnp.float32) * 0.05
    bl = jax.random.normal(k_bl, (1, O), dtype=jnp.float32) * 0.05

    input_seq = jax.random.randint(k_in, (B, L), 0, VOCAB, dtype=jnp.int32)

    out = textcnn_forward(input_seq, emb_table, w1, b1, w2a, w2b, b2, wl, bl)
    out = jax.block_until_ready(out)

    ref = reference_forward(input_seq, emb_table, w1, b1, w2a, w2b, b2, wl, bl)
    assert out.shape == (B, O)
    # 1e-3: the kernel chains MXU matmuls (one-hot gather + fused linear) whose f32
    # emulation rounds slightly differently from the XLA highest-precision reference.
    assert jnp.allclose(out, ref, rtol=1e-3, atol=1e-3), (out, ref)

    print("KERNEL_OK")
</pallas_src>

<mosaic_0001>
module attributes {stable_mosaic.version = 11 : i64} {
  func.func @textcnn_kernel(%arg0: i32, %arg1: memref<8x16xi32, #tpu.memory_space<vmem>>, %arg2: memref<128x384xf32, #tpu.memory_space<vmem>>, %arg3: memref<256x128xf32, #tpu.memory_space<vmem>>, %arg4: memref<1x128xf32, #tpu.memory_space<vmem>>, %arg5: memref<8x128xf32, #tpu.memory_space<vmem>>) attributes {dimension_semantics = [#tpu.dimension_semantics<parallel>], iteration_bounds = array<i64: 1>, scalar_prefetch = 0 : i64, scratch_operands = 0 : i64, tpu.core_type = #tpu.core_type<tc>, window_params = [{transform_indices = @transform_0, window_bounds = array<i64: 8, 16>}, {pipeline_mode = #tpu.pipeline_mode<synchronous>, transform_indices = @transform_1, window_bounds = array<i64: 128, 384>}, {pipeline_mode = #tpu.pipeline_mode<synchronous>, transform_indices = @transform_2, window_bounds = array<i64: 256, 128>}, {pipeline_mode = #tpu.pipeline_mode<synchronous>, transform_indices = @transform_3, window_bounds = array<i64: 1, 128>}, {transform_indices = @transform_4, window_bounds = array<i64: 8, 128>}]} {
    %c0 = arith.constant 0 : index
    %c0_0 = arith.constant 0 : index
    %0 = vector.load %arg2[%c0, %c0_0] : memref<128x384xf32, #tpu.memory_space<vmem>>, vector<128x384xf32>
    %c0_1 = arith.constant 0 : index
    %c0_2 = arith.constant 0 : index
    %1 = vector.load %arg1[%c0_1, %c0_2] : memref<8x16xi32, #tpu.memory_space<vmem>>, vector<8x16xi32>
    %2 = tpu.iota {dimensions = array<i32: 1>} : vector<8x128xi32>
    %cst = arith.constant 0.000000e+00 : f32
    %3 = vector.broadcast %cst : f32 to vector<8x128xf32>
    %cst_3 = arith.constant 0.000000e+00 : f32
    %4 = vector.broadcast %cst_3 : f32 to vector<8x128xf32>
    %5 = vector.extract_strided_slice %1 {offsets = [0, 0], sizes = [8, 1], strides = [1, 1]} : vector<8x16xi32> to vector<8x1xi32>
    %6 = vector.broadcast %5 : vector<8x1xi32> to vector<8x128xi32>
    %7 = arith.cmpi eq, %6, %2 : vector<8x128xi32>
    %8 = arith.extui %7 : vector<8x128xi1> to vector<8x128xi32>
    %9 = arith.sitofp %8 : vector<8x128xi32> to vector<8x128xf32>
    %cst_4 = arith.constant dense<0.000000e+00> : vector<8x384xf32>
    %10 = tpu.matmul %9, %0, %cst_4 {dimension_numbers = #tpu.dot_dimension_numbers<[1], [0], [0], [1], [0, 0, 1, 1], [], []>} : vector<8x128xf32>, vector<128x384xf32>, vector<8x384xf32> -> vector<8x384xf32>
    %11 = vector.extract_strided_slice %10 {offsets = [0, 0], sizes = [8, 128], strides = [1, 1]} : vector<8x384xf32> to vector<8x128xf32>
    %12 = vector.extract_strided_slice %10 {offsets = [0, 128], sizes = [8, 128], strides = [1, 1]} : vector<8x384xf32> to vector<8x128xf32>
    %13 = arith.maximumf %3, %11 : vector<8x128xf32>
    %14 = vector.extract_strided_slice %1 {offsets = [0, 1], sizes = [8, 1], strides = [1, 1]} : vector<8x16xi32> to vector<8x1xi32>
    %15 = vector.broadcast %14 : vector<8x1xi32> to vector<8x128xi32>
    %16 = arith.cmpi eq, %15, %2 : vector<8x128xi32>
    %17 = arith.extui %16 : vector<8x128xi1> to vector<8x128xi32>
    %18 = arith.sitofp %17 : vector<8x128xi32> to vector<8x128xf32>
    %cst_5 = arith.constant dense<0.000000e+00> : vector<8x384xf32>
    %19 = tpu.matmul %18, %0, %cst_5 {dimension_numbers = #tpu.dot_dimension_numbers<[1], [0], [0], [1], [0, 0, 1, 1], [], []>} : vector<8x128xf32>, vector<128x384xf32>, vector<8x384xf32> -> vector<8x384xf32>
    %20 = vector.extract_strided_slice %19 {offsets = [0, 0], sizes = [8, 128], strides = [1, 1]} : vector<8x384xf32> to vector<8x128xf32>
    %21 = vector.extract_strided_slice %19 {offsets = [0, 128], sizes = [8, 128], strides = [1, 1]} : vector<8x384xf32> to vector<8x128xf32>
    %22 = vector.extract_strided_slice %19 {offsets = [0, 256], sizes = [8, 128], strides = [1, 1]} : vector<8x384xf32> to vector<8x128xf32>
    %23 = arith.maximumf %13, %20 : vector<8x128xf32>
    %24 = arith.addf %12, %22 : vector<8x128xf32>
    %25 = arith.maximumf %4, %24 : vector<8x128xf32>
    %26 = vector.extract_strided_slice %1 {offsets = [0, 2], sizes = [8, 1], strides = [1, 1]} : vector<8x16xi32> to vector<8x1xi32>
    %27 = vector.broadcast %26 : vector<8x1xi32> to vector<8x128xi32>
    %28 = arith.cmpi eq, %27, %2 : vector<8x128xi32>
    %29 = arith.extui %28 : vector<8x128xi1> to vector<8x128xi32>
    %30 = arith.sitofp %29 : vector<8x128xi32> to vector<8x128xf32>
    %cst_6 = arith.constant dense<0.000000e+00> : vector<8x384xf32>
    %31 = tpu.matmul %30, %0, %cst_6 {dimension_numbers = #tpu.dot_dimension_numbers<[1], [0], [0], [1], [0, 0, 1, 1], [], []>} : vector<8x128xf32>, vector<128x384xf32>, vector<8x384xf32> -> vector<8x384xf32>
    %32 = vector.extract_strided_slice %31 {offsets = [0, 0], sizes = [8, 128], strides = [1, 1]} : vector<8x384xf32> to vector<8x128xf32>
    %33 = vector.extract_strided_slice %31 {offsets = [0, 128], sizes = [8, 128], strides = [1, 1]} : vector<8x384xf32> to vector<8x128xf32>
    %34 = vector.extract_strided_slice %31 {offsets = [0, 256], sizes = [8, 128], strides = [1, 1]} : vector<8x384xf32> to vector<8x128xf32>
    %35 = arith.maximumf %23, %32 : vector<8x128xf32>
    %36 = arith.addf %21, %34 : vector<8x128xf32>
    %37 = arith.maximumf %25, %36 : vector<8x128xf32>
    %38 = vector.extract_strided_slice %1 {offsets = [0, 3], sizes = [8, 1], strides = [1, 1]} : vector<8x16xi32> to vector<8x1xi32>
    %39 = vector.broadcast %38 : vector<8x1xi32> to vector<8x128xi32>
    %40 = arith.cmpi eq, %39, %2 : vector<8x128xi32>
    %41 = arith.extui %40 : vector<8x128xi1> to vector<8x128xi32>
    %42 = arith.sitofp %41 : vector<8x128xi32> to vector<8x128xf32>
    %cst_7 = arith.constant dense<0.000000e+00> : vector<8x384xf32>
    %43 = tpu.matmul %42, %0, %cst_7 {dimension_numbers = #tpu.dot_dimension_numbers<[1], [0], [0], [1], [0, 0, 1, 1], [], []>} : vector<8x128xf32>, vector<128x384xf32>, vector<8x384xf32> -> vector<8x384xf32>
    %44 = vector.extract_strided_slice %43 {offsets = [0, 0], sizes = [8, 128], strides = [1, 1]} : vector<8x384xf32> to vector<8x128xf32>
    %45 = vector.extract_strided_slice %43 {offsets = [0, 128], sizes = [8, 128], strides = [1, 1]} : vector<8x384xf32> to vector<8x128xf32>
    %46 = vector.extract_strided_slice %43 {offsets = [0, 256], sizes = [8, 128], strides = [1, 1]} : vector<8x384xf32> to vector<8x128xf32>
    %47 = arith.maximumf %35, %44 : vector<8x128xf32>
    %48 = arith.addf %33, %46 : vector<8x128xf32>
    %49 = arith.maximumf %37, %48 : vector<8x128xf32>
    %50 = vector.extract_strided_slice %1 {offsets = [0, 4], sizes = [8, 1], strides = [1, 1]} : vector<8x16xi32> to vector<8x1xi32>
    %51 = vector.broadcast %50 : vector<8x1xi32> to vector<8x128xi32>
    %52 = arith.cmpi eq, %51, %2 : vector<8x128xi32>
    %53 = arith.extui %52 : vector<8x128xi1> to vector<8x128xi32>
    %54 = arith.sitofp %53 : vector<8x128xi32> to vector<8x128xf32>
    %cst_8 = arith.constant dense<0.000000e+00> : vector<8x384xf32>
    %55 = tpu.matmul %54, %0, %cst_8 {dimension_numbers = #tpu.dot_dimension_numbers<[1], [0], [0], [1], [0, 0, 1, 1], [], []>} : vector<8x128xf32>, vector<128x384xf32>, vector<8x384xf32> -> vector<8x384xf32>
    %56 = vector.extract_strided_slice %55 {offsets = [0, 0], sizes = [8, 128], strides = [1, 1]} : vector<8x384xf32> to vector<8x128xf32>
    %57 = vector.extract_strided_slice %55 {offsets = [0, 128], sizes = [8, 128], strides = [1, 1]} : vector<8x384xf32> to vector<8x128xf32>
    %58 = vector.extract_strided_slice %55 {offsets = [0, 256], sizes = [8, 128], strides = [1, 1]} : vector<8x384xf32> to vector<8x128xf32>
    %59 = arith.maximumf %47, %56 : vector<8x128xf32>
    %60 = arith.addf %45, %58 : vector<8x128xf32>
    %61 = arith.maximumf %49, %60 : vector<8x128xf32>
    %62 = vector.extract_strided_slice %1 {offsets = [0, 5], sizes = [8, 1], strides = [1, 1]} : vector<8x16xi32> to vector<8x1xi32>
    %63 = vector.broadcast %62 : vector<8x1xi32> to vector<8x128xi32>
    %64 = arith.cmpi eq, %63, %2 : vector<8x128xi32>
    %65 = arith.extui %64 : vector<8x128xi1> to vector<8x128xi32>
    %66 = arith.sitofp %65 : vector<8x128xi32> to vector<8x128xf32>
    %cst_9 = arith.constant dense<0.000000e+00> : vector<8x384xf32>
    %67 = tpu.matmul %66, %0, %cst_9 {dimension_numbers = #tpu.dot_dimension_numbers<[1], [0], [0], [1], [0, 0, 1, 1], [], []>} : vector<8x128xf32>, vector<128x384xf32>, vector<8x384xf32> -> vector<8x384xf32>
    %68 = vector.extract_strided_slice %67 {offsets = [0, 0], sizes = [8, 128], strides = [1, 1]} : vector<8x384xf32> to vector<8x128xf32>
    %69 = vector.extract_strided_slice %67 {offsets = [0, 128], sizes = [8, 128], strides = [1, 1]} : vector<8x384xf32> to vector<8x128xf32>
    %70 = vector.extract_strided_slice %67 {offsets = [0, 256], sizes = [8, 128], strides = [1, 1]} : vector<8x384xf32> to vector<8x128xf32>
    %71 = arith.maximumf %59, %68 : vector<8x128xf32>
    %72 = arith.addf %57, %70 : vector<8x128xf32>
    %73 = arith.maximumf %61, %72 : vector<8x128xf32>
    %74 = vector.extract_strided_slice %1 {offsets = [0, 6], sizes = [8, 1], strides = [1, 1]} : vector<8x16xi32> to vector<8x1xi32>
    %75 = vector.broadcast %74 : vector<8x1xi32> to vector<8x128xi32>
    %76 = arith.cmpi eq, %75, %2 : vector<8x128xi32>
    %77 = arith.extui %76 : vector<8x128xi1> to vector<8x128xi32>
    %78 = arith.sitofp %77 : vector<8x128xi32> to vector<8x128xf32>
    %cst_10 = arith.constant dense<0.000000e+00> : vector<8x384xf32>
    %79 = tpu.matmul %78, %0, %cst_10 {dimension_numbers = #tpu.dot_dimension_numbers<[1], [0], [0], [1], [0, 0, 1, 1], [], []>} : vector<8x128xf32>, vector<128x384xf32>, vector<8x384xf32> -> vector<8x384xf32>
    %80 = vector.extract_strided_slice %79 {offsets = [0, 0], sizes = [8, 128], strides = [1, 1]} : vector<8x384xf32> to vector<8x128xf32>
    %81 = vector.extract_strided_slice %79 {offsets = [0, 128], sizes = [8, 128], strides = [1, 1]} : vector<8x384xf32> to vector<8x128xf32>
    %82 = vector.extract_strided_slice %79 {offsets = [0, 256], sizes = [8, 128], strides = [1, 1]} : vector<8x384xf32> to vector<8x128xf32>
    %83 = arith.maximumf %71, %80 : vector<8x128xf32>
    %84 = arith.addf %69, %82 : vector<8x128xf32>
    %85 = arith.maximumf %73, %84 : vector<8x128xf32>
    %86 = vector.extract_strided_slice %1 {offsets = [0, 7], sizes = [8, 1], strides = [1, 1]} : vector<8x16xi32> to vector<8x1xi32>
    %87 = vector.broadcast %86 : vector<8x1xi32> to vector<8x128xi32>
    %88 = arith.cmpi eq, %87, %2 : vector<8x128xi32>
    %89 = arith.extui %88 : vector<8x128xi1> to vector<8x128xi32>
    %90 = arith.sitofp %89 : vector<8x128xi32> to vector<8x128xf32>
    %cst_11 = arith.constant dense<0.000000e+00> : vector<8x384xf32>
    %91 = tpu.matmul %90, %0, %cst_11 {dimension_numbers = #tpu.dot_dimension_numbers<[1], [0], [0], [1], [0, 0, 1, 1], [], []>} : vector<8x128xf32>, vector<128x384xf32>, vector<8x384xf32> -> vector<8x384xf32>
    %92 = vector.extract_strided_slice %91 {offsets = [0, 0], sizes = [8, 128], strides = [1, 1]} : vector<8x384xf32> to vector<8x128xf32>
    %93 = vector.extract_strided_slice %91 {offsets = [0, 128], sizes = [8, 128], strides = [1, 1]} : vector<8x384xf32> to vector<8x128xf32>
    %94 = vector.extract_strided_slice %91 {offsets = [0, 256], sizes = [8, 128], strides = [1, 1]} : vector<8x384xf32> to vector<8x128xf32>
    %95 = arith.maximumf %83, %92 : vector<8x128xf32>
    %96 = arith.addf %81, %94 : vector<8x128xf32>
    %97 = arith.maximumf %85, %96 : vector<8x128xf32>
    %98 = vector.extract_strided_slice %1 {offsets = [0, 8], sizes = [8, 1], strides = [1, 1]} : vector<8x16xi32> to vector<8x1xi32>
    %99 = vector.broadcast %98 : vector<8x1xi32> to vector<8x128xi32>
    %100 = arith.cmpi eq, %99, %2 : vector<8x128xi32>
    %101 = arith.extui %100 : vector<8x128xi1> to vector<8x128xi32>
    %102 = arith.sitofp %101 : vector<8x128xi32> to vector<8x128xf32>
    %cst_12 = arith.constant dense<0.000000e+00> : vector<8x384xf32>
    %103 = tpu.matmul %102, %0, %cst_12 {dimension_numbers = #tpu.dot_dimension_numbers<[1], [0], [0], [1], [0, 0, 1, 1], [], []>} : vector<8x128xf32>, vector<128x384xf32>, vector<8x384xf32> -> vector<8x384xf32>
    %104 = vector.extract_strided_slice %103 {offsets = [0, 0], sizes = [8, 128], strides = [1, 1]} : vector<8x384xf32> to vector<8x128xf32>
    %105 = vector.extract_strided_slice %103 {offsets = [0, 128], sizes = [8, 128], strides = [1, 1]} : vector<8x384xf32> to vector<8x128xf32>
    %106 = vector.extract_strided_slice %103 {offsets = [0, 256], sizes = [8, 128], strides = [1, 1]} : vector<8x384xf32> to vector<8x128xf32>
    %107 = arith.maximumf %95, %104 : vector<8x128xf32>
    %108 = arith.addf %93, %106 : vector<8x128xf32>
    %109 = arith.maximumf %97, %108 : vector<8x128xf32>
    %110 = vector.extract_strided_slice %1 {offsets = [0, 9], sizes = [8, 1], strides = [1, 1]} : vector<8x16xi32> to vector<8x1xi32>
    %111 = vector.broadcast %110 : vector<8x1xi32> to vector<8x128xi32>
    %112 = arith.cmpi eq, %111, %2 : vector<8x128xi32>
    %113 = arith.extui %112 : vector<8x128xi1> to vector<8x128xi32>
    %114 = arith.sitofp %113 : vector<8x128xi32> to vector<8x128xf32>
    %cst_13 = arith.constant dense<0.000000e+00> : vector<8x384xf32>
    %115 = tpu.matmul %114, %0, %cst_13 {dimension_numbers = #tpu.dot_dimension_numbers<[1], [0], [0], [1], [0, 0, 1, 1], [], []>} : vector<8x128xf32>, vector<128x384xf32>, vector<8x384xf32> -> vector<8x384xf32>
    %116 = vector.extract_strided_slice %115 {offsets = [0, 0], sizes = [8, 128], strides = [1, 1]} : vector<8x384xf32> to vector<8x128xf32>
    %117 = vector.extract_strided_slice %115 {offsets = [0, 128], sizes = [8, 128], strides = [1, 1]} : vector<8x384xf32> to vector<8x128xf32>
    %118 = vector.extract_strided_slice %115 {offsets = [0, 256], sizes = [8, 128], strides = [1, 1]} : vector<8x384xf32> to vector<8x128xf32>
    %119 = arith.maximumf %107, %116 : vector<8x128xf32>
    %120 = arith.addf %105, %118 : vector<8x128xf32>
    %121 = arith.maximumf %109, %120 : vector<8x128xf32>
    %122 = vector.extract_strided_slice %1 {offsets = [0, 10], sizes = [8, 1], strides = [1, 1]} : vector<8x16xi32> to vector<8x1xi32>
    %123 = vector.broadcast %122 : vector<8x1xi32> to vector<8x128xi32>
    %124 = arith.cmpi eq, %123, %2 : vector<8x128xi32>
    %125 = arith.extui %124 : vector<8x128xi1> to vector<8x128xi32>
    %126 = arith.sitofp %125 : vector<8x128xi32> to vector<8x128xf32>
    %cst_14 = arith.constant dense<0.000000e+00> : vector<8x384xf32>
    %127 = tpu.matmul %126, %0, %cst_14 {dimension_numbers = #tpu.dot_dimension_numbers<[1], [0], [0], [1], [0, 0, 1, 1], [], []>} : vector<8x128xf32>, vector<128x384xf32>, vector<8x384xf32> -> vector<8x384xf32>
    %128 = vector.extract_strided_slice %127 {offsets = [0, 0], sizes = [8, 128], strides = [1, 1]} : vector<8x384xf32> to vector<8x128xf32>
    %129 = vector.extract_strided_slice %127 {offsets = [0, 128], sizes = [8, 128], strides = [1, 1]} : vector<8x384xf32> to vector<8x128xf32>
    %130 = vector.extract_strided_slice %127 {offsets = [0, 256], sizes = [8, 128], strides = [1, 1]} : vector<8x384xf32> to vector<8x128xf32>
    %131 = arith.maximumf %119, %128 : vector<8x128xf32>
    %132 = arith.addf %117, %130 : vector<8x128xf32>
    %133 = arith.maximumf %121, %132 : vector<8x128xf32>
    %134 = vector.extract_strided_slice %1 {offsets = [0, 11], sizes = [8, 1], strides = [1, 1]} : vector<8x16xi32> to vector<8x1xi32>
    %135 = vector.broadcast %134 : vector<8x1xi32> to vector<8x128xi32>
    %136 = arith.cmpi eq, %135, %2 : vector<8x128xi32>
    %137 = arith.extui %136 : vector<8x128xi1> to vector<8x128xi32>
    %138 = arith.sitofp %137 : vector<8x128xi32> to vector<8x128xf32>
    %cst_15 = arith.constant dense<0.000000e+00> : vector<8x384xf32>
    %139 = tpu.matmul %138, %0, %cst_15 {dimension_numbers = #tpu.dot_dimension_numbers<[1], [0], [0], [1], [0, 0, 1, 1], [], []>} : vector<8x128xf32>, vector<128x384xf32>, vector<8x384xf32> -> vector<8x384xf32>
    %140 = vector.extract_strided_slice %139 {offsets = [0, 0], sizes = [8, 128], strides = [1, 1]} : vector<8x384xf32> to vector<8x128xf32>
    %141 = vector.extract_strided_slice %139 {offsets = [0, 128], sizes = [8, 128], strides = [1, 1]} : vector<8x384xf32> to vector<8x128xf32>
    %142 = vector.extract_strided_slice %139 {offsets = [0, 256], sizes = [8, 128], strides = [1, 1]} : vector<8x384xf32> to vector<8x128xf32>
    %143 = arith.maximumf %131, %140 : vector<8x128xf32>
    %144 = arith.addf %129, %142 : vector<8x128xf32>
    %145 = arith.maximumf %133, %144 : vector<8x128xf32>
    %146 = vector.extract_strided_slice %1 {offsets = [0, 12], sizes = [8, 1], strides = [1, 1]} : vector<8x16xi32> to vector<8x1xi32>
    %147 = vector.broadcast %146 : vector<8x1xi32> to vector<8x128xi32>
    %148 = arith.cmpi eq, %147, %2 : vector<8x128xi32>
    %149 = arith.extui %148 : vector<8x128xi1> to vector<8x128xi32>
    %150 = arith.sitofp %149 : vector<8x128xi32> to vector<8x128xf32>
    %cst_16 = arith.constant dense<0.000000e+00> : vector<8x384xf32>
    %151 = tpu.matmul %150, %0, %cst_16 {dimension_numbers = #tpu.dot_dimension_numbers<[1], [0], [0], [1], [0, 0, 1, 1], [], []>} : vector<8x128xf32>, vector<128x384xf32>, vector<8x384xf32> -> vector<8x384xf32>
    %152 = vector.extract_strided_slice %151 {offsets = [0, 0], sizes = [8, 128], strides = [1, 1]} : vector<8x384xf32> to vector<8x128xf32>
    %153 = vector.extract_strided_slice %151 {offsets = [0, 128], sizes = [8, 128], strides = [1, 1]} : vector<8x384xf32> to vector<8x128xf32>
    %154 = vector.extract_strided_slice %151 {offsets = [0, 256], sizes = [8, 128], strides = [1, 1]} : vector<8x384xf32> to vector<8x128xf32>
    %155 = arith.maximumf %143, %152 : vector<8x128xf32>
    %156 = arith.addf %141, %154 : vector<8x128xf32>
    %157 = arith.maximumf %145, %156 : vector<8x128xf32>
    %158 = vector.extract_strided_slice %1 {offsets = [0, 13], sizes = [8, 1], strides = [1, 1]} : vector<8x16xi32> to vector<8x1xi32>
    %159 = vector.broadcast %158 : vector<8x1xi32> to vector<8x128xi32>
    %160 = arith.cmpi eq, %159, %2 : vector<8x128xi32>
    %161 = arith.extui %160 : vector<8x128xi1> to vector<8x128xi32>
    %162 = arith.sitofp %161 : vector<8x128xi32> to vector<8x128xf32>
    %cst_17 = arith.constant dense<0.000000e+00> : vector<8x384xf32>
    %163 = tpu.matmul %162, %0, %cst_17 {dimension_numbers = #tpu.dot_dimension_numbers<[1], [0], [0], [1], [0, 0, 1, 1], [], []>} : vector<8x128xf32>, vector<128x384xf32>, vector<8x384xf32> -> vector<8x384xf32>
    %164 = vector.extract_strided_slice %163 {offsets = [0, 0], sizes = [8, 128], strides = [1, 1]} : vector<8x384xf32> to vector<8x128xf32>
    %165 = vector.extract_strided_slice %163 {offsets = [0, 128], sizes = [8, 128], strides = [1, 1]} : vector<8x384xf32> to vector<8x128xf32>
    %166 = vector.extract_strided_slice %163 {offsets = [0, 256], sizes = [8, 128], strides = [1, 1]} : vector<8x384xf32> to vector<8x128xf32>
    %167 = arith.maximumf %155, %164 : vector<8x128xf32>
    %168 = arith.addf %153, %166 : vector<8x128xf32>
    %169 = arith.maximumf %157, %168 : vector<8x128xf32>
    %170 = vector.extract_strided_slice %1 {offsets = [0, 14], sizes = [8, 1], strides = [1, 1]} : vector<8x16xi32> to vector<8x1xi32>
    %171 = vector.broadcast %170 : vector<8x1xi32> to vector<8x128xi32>
    %172 = arith.cmpi eq, %171, %2 : vector<8x128xi32>
    %173 = arith.extui %172 : vector<8x128xi1> to vector<8x128xi32>
    %174 = arith.sitofp %173 : vector<8x128xi32> to vector<8x128xf32>
    %cst_18 = arith.constant dense<0.000000e+00> : vector<8x384xf32>
    %175 = tpu.matmul %174, %0, %cst_18 {dimension_numbers = #tpu.dot_dimension_numbers<[1], [0], [0], [1], [0, 0, 1, 1], [], []>} : vector<8x128xf32>, vector<128x384xf32>, vector<8x384xf32> -> vector<8x384xf32>
    %176 = vector.extract_strided_slice %175 {offsets = [0, 0], sizes = [8, 128], strides = [1, 1]} : vector<8x384xf32> to vector<8x128xf32>
    %177 = vector.extract_strided_slice %175 {offsets = [0, 128], sizes = [8, 128], strides = [1, 1]} : vector<8x384xf32> to vector<8x128xf32>
    %178 = vector.extract_strided_slice %175 {offsets = [0, 256], sizes = [8, 128], strides = [1, 1]} : vector<8x384xf32> to vector<8x128xf32>
    %179 = arith.maximumf %167, %176 : vector<8x128xf32>
    %180 = arith.addf %165, %178 : vector<8x128xf32>
    %181 = arith.maximumf %169, %180 : vector<8x128xf32>
    %182 = vector.extract_strided_slice %1 {offsets = [0, 15], sizes = [8, 1], strides = [1, 1]} : vector<8x16xi32> to vector<8x1xi32>
    %183 = vector.broadcast %182 : vector<8x1xi32> to vector<8x128xi32>
    %184 = arith.cmpi eq, %183, %2 : vector<8x128xi32>
    %185 = arith.extui %184 : vector<8x128xi1> to vector<8x128xi32>
    %186 = arith.sitofp %185 : vector<8x128xi32> to vector<8x128xf32>
    %cst_19 = arith.constant dense<0.000000e+00> : vector<8x384xf32>
    %187 = tpu.matmul %186, %0, %cst_19 {dimension_numbers = #tpu.dot_dimension_numbers<[1], [0], [0], [1], [0, 0, 1, 1], [], []>} : vector<8x128xf32>, vector<128x384xf32>, vector<8x384xf32> -> vector<8x384xf32>
    %188 = vector.extract_strided_slice %187 {offsets = [0, 0], sizes = [8, 128], strides = [1, 1]} : vector<8x384xf32> to vector<8x128xf32>
    %189 = vector.extract_strided_slice %187 {offsets = [0, 256], sizes = [8, 128], strides = [1, 1]} : vector<8x384xf32> to vector<8x128xf32>
    %190 = arith.maximumf %179, %188 : vector<8x128xf32>
    %191 = arith.addf %177, %189 : vector<8x128xf32>
    %192 = arith.maximumf %181, %191 : vector<8x128xf32>
    %193 = tpu.concatenate %190, %192 in 1 : vector<8x128xf32>, vector<8x128xf32> -> vector<8x256xf32>
    %c0_20 = arith.constant 0 : index
    %c0_21 = arith.constant 0 : index
    %194 = vector.load %arg3[%c0_20, %c0_21] : memref<256x128xf32, #tpu.memory_space<vmem>>, vector<256x128xf32>
    %cst_22 = arith.constant dense<0.000000e+00> : vector<8x128xf32>
    %195 = tpu.matmul %193, %194, %cst_22 {dimension_numbers = #tpu.dot_dimension_numbers<[1], [0], [0], [1], [0, 0, 1, 1], [], []>} : vector<8x256xf32>, vector<256x128xf32>, vector<8x128xf32> -> vector<8x128xf32>
    %c0_23 = arith.constant 0 : index
    %c0_24 = arith.constant 0 : index
    %196 = vector.load %arg4[%c0_23, %c0_24] : memref<1x128xf32, #tpu.memory_space<vmem>>, vector<1x128xf32>
    %197 = vector.broadcast %196 : vector<1x128xf32> to vector<8x128xf32>
    %198 = arith.addf %195, %197 : vector<8x128xf32>
    %cst_25 = arith.constant dense<0xFF800000> : vector<8xf32>
    %199 = vector.multi_reduction <maximumf>, %198, %cst_25 [1] : vector<8x128xf32> to vector<8xf32>
    %200 = vector.shape_cast %199 : vector<8xf32> to vector<8x1xf32>
    %201 = vector.broadcast %200 : vector<8x1xf32> to vector<8x128xf32>
    %202 = arith.subf %198, %201 : vector<8x128xf32>
    %203 = math.exp %202 : vector<8x128xf32>
    %cst_26 = arith.constant dense<0.000000e+00> : vector<8xf32>
    %204 = vector.multi_reduction <add>, %203, %cst_26 [1] : vector<8x128xf32> to vector<8xf32>
    %205 = vector.shape_cast %204 : vector<8xf32> to vector<8x1xf32>
    %206 = math.log %205 : vector<8x1xf32>
    %207 = vector.broadcast %206 : vector<8x1xf32> to vector<8x128xf32>
    %208 = arith.subf %202, %207 : vector<8x128xf32>
    %c0_27 = arith.constant 0 : index
    %c0_28 = arith.constant 0 : index
    %209 = vector.load %arg5[%c0_27, %c0_28] : memref<8x128xf32, #tpu.memory_space<vmem>>, vector<8x128xf32>
    tpu.vector_store %arg5[%c0_27, %c0_28], %208 {strides = array<i32>} : memref<8x128xf32, #tpu.memory_space<vmem>>, vector<8x128xf32>,
    return
  }
  func.func @transform_0(%arg0: i32) -> (i32, i32) {
    %c0_i32 = arith.constant 0 : i32
    %c0_i32_0 = arith.constant 0 : i32
    return %arg0, %c0_i32 : i32, i32
  }
  func.func @transform_1(%arg0: i32) -> (i32, i32) {
    %c0_i32 = arith.constant 0 : i32
    %c0_i32_0 = arith.constant 0 : i32
    %c0_i32_1 = arith.constant 0 : i32
    return %c0_i32, %c0_i32_0 : i32, i32
  }
  func.func @transform_2(%arg0: i32) -> (i32, i32) {
    %c0_i32 = arith.constant 0 : i32
    %c0_i32_0 = arith.constant 0 : i32
    %c0_i32_1 = arith.constant 0 : i32
    return %c0_i32, %c0_i32_0 : i32, i32
  }
  func.func @transform_3(%arg0: i32) -> (i32, i32) {
    %c0_i32 = arith.constant 0 : i32
    %c0_i32_0 = arith.constant 0 : i32
    %c0_i32_1 = arith.constant 0 : i32
    return %c0_i32, %c0_i32_0 : i32, i32
  }
  func.func @transform_4(%arg0: i32) -> (i32, i32) {
    %c0_i32 = arith.constant 0 : i32
    %c0_i32_0 = arith.constant 0 : i32
    return %arg0, %c0_i32 : i32, i32
  }
}

</mosaic_0001>

<bundles_post_ra>
// kernel: tpu_custom_call.1
= control target key start
LH: loop header
LB: loop body
LE: loop exit
PB: predicated region body
PF: predicated region fallthrough
CT: control target
= control target key end

     0   :  { %9 = vsyncpa [#allocation3], 0  ;;  %s5356_s0 = inlined_call_operand.hbm [shape: s32[8,16], index: 0, kind: input, shape index: {}]   ;;  %s5357_s1 = inlined_call_operand.hbm [shape: f32[128,384], index: 1, kind: input, shape index: {}]   ;;  %s5358_s2 = inlined_call_operand.hbm [shape: f32[256,128], index: 2, kind: input, shape index: {}]   ;;  %s5359_s3 = inlined_call_operand.vmem [shape: f32[1,128], index: 3, kind: input, shape index: {}]   ;;  %s5360_s4 = inlined_call_operand.hbm [shape: f32[8,128], index: 4, kind: output, shape index: {}]  }
   0x1   :  { %10 = vsyncpa [#allocation6], 0 }
   0x2   :  { %11 = vsyncpa [#allocation4], 0  ;;  %s4481_s15 = smov [#allocation5]   ;;  %s4387_s19 = scalar_lea.hbm %s5357_s1, 6144 }
   0x3   :  { %s27_s16 = sshll.u32 %s4481_s15, 4  ;;  %p4388_p0 = scmp.ne.s32.totalorder %s5357_s1, %s4387_s19  ;;  %s28_s16 = int_to_ptr.vmem [resolvable:$true] %s27_s16 }
   0x4   :  { %p4391_p1 = scmp.lt.u32.totalorder %s4387_s19, %s5357_s1 }
   0x6   :  { %p4393_p2 = pnand %p4391_p1, %p4388_p0 }
   0x8   :  { %4396 = shalt.err (!%p4393_p2)
}
   0x9   :  { %s4397_s24 = scalar_lea.vmem %s28_s16, 6144  ;;  %p4402_p4 = scmp.lt.s32.totalorder %s28_s16, %s28_s16 }
   0xa   :  { %p4398_p3 = scmp.ne.s32.totalorder %s28_s16, %s4397_s24  ;;  %p4403_p5 = scmp.lt.s32.totalorder %s4397_s24, %s4397_s24 }
   0xc   :  { %p4404_p6 = por %p4403_p5, %p4402_p4 }
   0xe   :  { %p4405_p7 = pnand %p4404_p6, %p4398_p3 }
  0x10   :  { %4408 = shalt.err (!%p4405_p7)
}
  0x11   :  { %s4482_s25 = smov 384   ;;  %s4483_s26 = smov 24  }
  0x12   :  { %33 = dma.hbm_to_vmem [thread:$0]  %s5357_s1, 6144, %s28_s16, [#allocation6], %s4482_s25, %s4482_s25, %s4483_s26  }
  0x13   :  { %s4484_s29 = smov [#allocation2]   ;;  %s4485_s5 = smov [#allocation7]  }
  0x14   :  { %s18_s30 = sshll.u32 %s4484_s29, 4  ;;  %s39_s6 = sshll.u32 %s4485_s5, 4  ;;  %s19_s30 = int_to_ptr.vmem [resolvable:$true] %s18_s30  ;;  %s40_s6 = int_to_ptr.vmem [resolvable:$true] %s39_s6 }
  0x15   :  { %s4409_s9 = scalar_lea.hbm %s5356_s0, 128 }
  0x16   :  { %p4410_p8 = scmp.ne.s32.totalorder %s5356_s0, %s4409_s9  ;;  %p4413_p9 = scmp.lt.u32.totalorder %s4409_s9, %s5356_s0 }
  0x18   :  { %p4415_p10 = pnand %p4413_p9, %p4410_p8 }
  0x1a   :  { %4418 = shalt.err (!%p4415_p10)
}
  0x1b   :  { %s4419_s1 = scalar_lea.vmem %s19_s30, 128  ;;  %p4424_p12 = scmp.lt.s32.totalorder %s19_s30, %s19_s30 }
  0x1c   :  { %p4420_p11 = scmp.ne.s32.totalorder %s19_s30, %s4419_s1  ;;  %p4425_p13 = scmp.lt.s32.totalorder %s4419_s1, %s4419_s1 }
  0x1e   :  { %p4426_p0 = por %p4425_p13, %p4424_p12 }
  0x20   :  { %p4427_p1 = pnand %p4426_p0, %p4420_p11 }
  0x22   :  { %4430 = shalt.err (!%p4427_p1)
}
  0x23   :  { %21 = dma.hbm_to_vmem [thread:$0]  %s5356_s0, 128, %s19_s30, [#allocation3]  }
  0x24   :  { %s4431_s18 = scalar_lea.hbm %s5358_s2, 4096 }
  0x25   :  { %p4432_p2 = scmp.ne.s32.totalorder %s5358_s2, %s4431_s18  ;;  %p4435_p3 = scmp.lt.u32.totalorder %s4431_s18, %s5358_s2 }
  0x27   :  { %p4437_p4 = pnand %p4435_p3, %p4432_p2 }
  0x29   :  { %4440 = shalt.err (!%p4437_p4)
}
  0x2a   :  { %s4441_s23 = scalar_lea.vmem %s40_s6, 4096  ;;  %p4446_p6 = scmp.lt.s32.totalorder %s40_s6, %s40_s6 }
  0x2b   :  { %p4442_p5 = scmp.ne.s32.totalorder %s40_s6, %s4441_s23  ;;  %p4447_p7 = scmp.lt.s32.totalorder %s4441_s23, %s4441_s23 }
  0x2d   :  { %p4448_p8 = por %p4447_p7, %p4446_p6 }
  0x2f   :  { %p4449_p9 = pnand %p4448_p8, %p4442_p5 }
  0x31   :  { %4452 = shalt.err (!%p4449_p9)
}
  0x32   :  { %s4486_s0 = smov 128   ;;  %s4487_s24 = smov 8  }
  0x33   :  { %45 = dma.hbm_to_vmem [thread:$0]  %s5358_s2, 4096, %s40_s6, [#allocation6], %s4486_s0, %s4486_s0, %s4487_s24  }
  0x34   :  { %4475 = dma.done.wait [#allocation3], 128  }
  0x35   :  { %4476 = vsyncadd [#allocation3], 4294967168 }
  0x36   :  { %4477 = dma.done.wait [#allocation6], 10240  }
  0x37   :  { %4478 = vsyncadd [#allocation6], 4294957056  ;;  %v4488_v0 = vmov 0   ;;  %v4489_v1 = vmov 2   ;;  %v4570_v2 = vld [vmem:[#allocation2] sm:$0xff]  ;;  %v58_v3 = vld [vmem:[#allocation5 + $0x8] sm:$0xff]  ;;  %v106_v60 = vlaneseq }
  0x38   :  { %4366 = vset.pattern.permute.xlu0 %v4488_v0  ;;  %4368 = vset.pattern.permute.xlu1 %v4489_v1  ;;  %v61_v4 = vld [vmem:[#allocation5 + $0x20] sm:$0xff]  ;;  %v60_v7 = vld [vmem:[#allocation5 + $0x18] sm:$0xff]  ;;  %v67_v10 = vld [vmem:[#allocation5 + $0x50] sm:$0xff]  ;;  %v4490_v13 = vmov 0.0   ;;  %v4491_v18 = vmov 1   ;;  %v4492_v19 = vmov 3  }
  0x39   :  { %109 = vperm.xlu0 %4366, %v4570_v2   ;;  %337 = vperm.xlu1 %4368, %v4570_v2   ;;  %v4574_v5 = vpack.c.bf16 %v61_v4, %v58_v3  ;;  %v57_v6 = vld [vmem:[#allocation5] sm:$0xff]  ;;  %v64_v8 = vld [vmem:[#allocation5 + $0x38] sm:$0xff]  ;;  %v63_v11 = vld [vmem:[#allocation5 + $0x30] sm:$0xff]  ;;  %v4493_v29 = vmov 4   ;;  %v4494_v32 = vmov 5   ;;  %v4495_v56 = vmov 0.0|0.0  }
  0x3a   :  { %v4576_v9 = vpack.c.bf16 %v60_v7, %v57_v6  ;;  %v66_v12 = vld [vmem:[#allocation5 + $0x48] sm:$0xff]  ;;  %178 = vmatprep.mubr.f32.mxu0 %v4490_v13  ;;  %256 = vmatprep.mubr.f32.mxu1 %v4490_v13  ;;  %v4581_v14 = vpack.c.bf16 %v67_v10, %v64_v8  ;;  %v73_v16 = vld [vmem:[#allocation5 + $0x80] sm:$0xff]  ;;  %v72_v22 = vld [vmem:[#allocation5 + $0x78] sm:$0xff]  ;;  %v4496_v57 = vmov 6   ;;  %v4497_v58 = vmov 7   ;;  %s4508_s28 = smov [#allocation8]  }
  0x3b   :  { %3435 = vmatprep.subr.bf16.mxu0 %v4574_v5  ;;  %3467 = vmatprep.subr.bf16.mxu1 %v4574_v5  ;;  %v70_v15 = vld [vmem:[#allocation5 + $0x68] sm:$0xff]  ;;  %v4585_v17 = vpack.c.bf16 %v66_v12, %v63_v11  ;;  %v69_v21 = vld [vmem:[#allocation5 + $0x60] sm:$0xff]  ;;  %v76_v23 = vld [vmem:[#allocation5 + $0x98] sm:$0xff]  ;;  %v4498_v59 = vmov 8   ;;  %v4649_v63 = vand.u32 127, %v106_v60  ;;  %v4499_v6 = vmov 1.0  }
  0x3c   :  { %3437 = vmatpush1.bf16.msra.mxu0 %v4576_v9  ;;  %3469 = vmatpush1.bf16.msra.mxu1 %v4576_v9  ;;  %v4588_v20 = vpack.c.bf16 %v73_v16, %v70_v15  ;;  %v79_v24 = vld [vmem:[#allocation5 + $0xb0] sm:$0xff]  ;;  %v4595_v25 = vpack.c.bf16 %v72_v22, %v69_v21  ;;  %v78_v28 = vld [vmem:[#allocation5 + $0xa8] sm:$0xff]  ;;  %v85_v31 = vld [vmem:[#allocation5 + $0xe0] sm:$0xff]  ;;  %vm4500_vm1 = vmmov 0   ;;  %v4501_v12 = vmov 9   ;;  %s2561_s29 = sshll.u32 %s4508_s28, 4  ;;  %s2562_s29 = int_to_ptr.vmem [resolvable:$true] %s2561_s29 }
  0x3d   :  { %4367 = vset.pattern.permute.xlu0 %v4491_v18  ;;  %4369 = vset.pattern.permute.xlu1 %v4492_v19  ;;  %v4599_v26 = vpack.c.bf16 %v79_v24, %v76_v23  ;;  %v75_v27 = vld [vmem:[#allocation5 + $0x90] sm:$0xff]  ;;  %v82_v30 = vld [vmem:[#allocation5 + $0xc8] sm:$0xff]  ;;  %v81_v35 = vld [vmem:[#allocation5 + $0xc0] sm:$0xff]  ;;  %s4453_s30 = scalar_lea.vmem %s2562_s29, 128  ;;  %p4458_p11 = scmp.lt.s32.totalorder %s2562_s29, %s2562_s29 }
  0x3e   :  { %187 = vperm.xlu0 %4367, %v4570_v2   ;;  %487 = vperm.xlu1 %4369, %v4570_v2   ;;  %v4605_v33 = vpack.c.bf16 %v78_v28, %v75_v27  ;;  %v4609_v34 = vpack.c.bf16 %v85_v31, %v82_v30  ;;  %v84_v36 = vld [vmem:[#allocation5 + $0xd8] sm:$0xff]  ;;  %v91_v38 = vld [vmem:[#allocation5 + $0x110] sm:$0xff]  ;;  %v90_v42 = vld [vmem:[#allocation5 + $0x108] sm:$0xff]  ;;  %p4454_p10 = scmp.ne.s32.totalorder %s2562_s29, %s4453_s30  ;;  %p4459_p12 = scmp.lt.s32.totalorder %s4453_s30, %s4453_s30 }
  0x3f   :  { %3439 = vmatprep.subr.bf16.mxu0 %v4581_v14  ;;  %3471 = vmatprep.subr.bf16.mxu1 %v4581_v14  ;;  %v88_v37 = vld [vmem:[#allocation5 + $0xf8] sm:$0xff]  ;;  %v4613_v39 = vpack.c.bf16 %v84_v36, %v81_v35  ;;  %v87_v41 = vld [vmem:[#allocation5 + $0xf0] sm:$0xff]  ;;  %v94_v43 = vld [vmem:[#allocation5 + $0x128] sm:$0xff] }
  0x40   :  { %3441 = vmatpush1.bf16.msra.mxu0 %v4585_v17  ;;  %3473 = vmatpush1.bf16.msra.mxu1 %v4585_v17  ;;  %v4617_v40 = vpack.c.bf16 %v91_v38, %v88_v37  ;;  %v97_v44 = vld [vmem:[#allocation5 + $0x140] sm:$0xff]  ;;  %v4621_v45 = vpack.c.bf16 %v90_v42, %v87_v41  ;;  %v96_v48 = vld [vmem:[#allocation5 + $0x138] sm:$0xff]  ;;  %v103_v50 = vld [vmem:[#allocation5 + $0x170] sm:$0xff]  ;;  %v4502_v38 = vmov 10   ;;  %v4503_v42 = vmov 11   ;;  %p4460_p13 = por %p4459_p12, %p4458_p11 }
  0x41   :  { %3443 = vmatprep.subr.bf16.mxu0 %v4588_v20  ;;  %3475 = vmatprep.subr.bf16.mxu1 %v4588_v20  ;;  %v4625_v46 = vpack.c.bf16 %v97_v44, %v94_v43  ;;  %v93_v47 = vld [vmem:[#allocation5 + $0x120] sm:$0xff]  ;;  %v100_v49 = vld [vmem:[#allocation5 + $0x158] sm:$0xff]  ;;  %v99_v53 = vld [vmem:[#allocation5 + $0x150] sm:$0xff]  ;;  %v4504_v44 = vmov 12  }
  0x42   :  { %4370 = vset.pattern.permute.xlu1 %v4493_v29  ;;  %4371 = vset.pattern.permute.xlu0 %v4494_v32  ;;  %v4629_v51 = vpack.c.bf16 %v96_v48, %v93_v47  ;;  %v4633_v52 = vpack.c.bf16 %v103_v50, %v100_v49  ;;  %v102_v54 = vld [vmem:[#allocation5 + $0x168] sm:$0xff]  ;;  %v59_v61 = vld [vmem:[#allocation5 + $0x10] sm:$0xff]  ;;  %v65_v3 = vld [vmem:[#allocation5 + $0x40] sm:$0xff]  ;;  %v4505_v48 = vmov 13   ;;  %v4506_v50 = vmov 14   ;;  %p4461_p0 = pnand %p4460_p13, %p4454_p10 }
  0x43   :  { %637 = vperm.xlu1 %4370, %v4570_v2   ;;  %787 = vperm.xlu0 %4371, %v4570_v2   ;;  %v4637_v55 = vpack.c.bf16 %v102_v54, %v99_v53  ;;  %v62_v62 = vld [vmem:[#allocation5 + $0x28] sm:$0xff]  ;;  %v68_v4 = vld [vmem:[#allocation5 + $0x58] sm:$0xff]  ;;  %v71_v8 = vld [vmem:[#allocation5 + $0x70] sm:$0xff]  ;;  %v4507_v54 = vmov 15  }
  0x44   :  { %3445 = vmatpush1.bf16.msra.mxu0 %v4595_v25  ;;  %3477 = vmatpush1.bf16.msra.mxu1 %v4595_v25  ;;  %v4651_v0 = vpack.c.bf16 %v62_v62, %v59_v61  ;;  %v4656_v7 = vpack.c.bf16 %v68_v4, %v65_v3  ;;  %v74_v10 = vld [vmem:[#allocation5 + $0x88] sm:$0xff]  ;;  %v77_v16 = vld [vmem:[#allocation5 + $0xa0] sm:$0xff]  ;;  %v80_v18 = vld [vmem:[#allocation5 + $0xb8] sm:$0xff] }
  0x45   :  { %3447 = vmatprep.subr.bf16.mxu0 %v4599_v26  ;;  %3479 = vmatprep.subr.bf16.mxu1 %v4599_v26  ;;  %v4667_v15 = vpack.c.bf16 %v74_v10, %v71_v8  ;;  %v4674_v19 = vpack.c.bf16 %v80_v18, %v77_v16  ;;  %v83_v21 = vld [vmem:[#allocation5 + $0xd0] sm:$0xff]  ;;  %v86_v22 = vld [vmem:[#allocation5 + $0xe8] sm:$0xff]  ;;  %v89_v24 = vld [vmem:[#allocation5 + $0x100] sm:$0xff] }
  0x46   :  { %v4680_v23 = vpack.c.bf16 %v86_v22, %v83_v21  ;;  %v92_v27 = vld [vmem:[#allocation5 + $0x118] sm:$0xff]  ;;  %v95_v29 = vld [vmem:[#allocation5 + $0x130] sm:$0xff]  ;;  %v98_v30 = vld [vmem:[#allocation5 + $0x148] sm:$0xff] }
  0x47   :  { %4372 = vset.pattern.permute.xlu1 %v4496_v57  ;;  %4374 = vset.pattern.permute.xlu0 %v4498_v59  ;;  %v4686_v28 = vpack.c.bf16 %v92_v27, %v89_v24  ;;  %v4692_v31 = vpack.c.bf16 %v98_v30, %v95_v29  ;;  %v101_v32 = vld [vmem:[#allocation5 + $0x160] sm:$0xff]  ;;  %v104_v35 = vld [vmem:[#allocation5 + $0x178] sm:$0xff] }
  0x48   :  { %3449 = vmatpush1.bf16.msra.mxu0 %v4605_v33  ;;  %3481 = vmatpush1.bf16.msra.mxu1 %v4605_v33  ;;  %v4698_v36 = vpack.c.bf16 %v104_v35, %v101_v32 }
  0x49   :  { %3451 = vmatprep.subr.bf16.mxu0 %v4609_v34  ;;  %3483 = vmatprep.subr.bf16.mxu1 %v4609_v34 }
  0x4a   :  { %937 = vperm.xlu1 %4372, %v4570_v2   ;;  %1237 = vperm.xlu0 %4374, %v4570_v2  }
  0x4c   :  { %3453 = vmatpush1.bf16.msra.mxu0 %v4613_v39  ;;  %3485 = vmatpush1.bf16.msra.mxu1 %v4613_v39 }
  0x4d   :  { %3455 = vmatprep.subr.bf16.mxu0 %v4617_v40  ;;  %3487 = vmatprep.subr.bf16.mxu1 %v4617_v40 }
  0x4e   :  { %4373 = vset.pattern.permute.xlu1 %v4497_v58  ;;  %4377 = vset.pattern.permute.xlu0 %v4503_v42 }
  0x4f   :  { %1087 = vperm.xlu1 %4373, %v4570_v2   ;;  %1687 = vperm.xlu0 %4377, %v4570_v2  }
  0x50   :  { %3457 = vmatpush1.bf16.msra.mxu0 %v4621_v45  ;;  %3489 = vmatpush1.bf16.msra.mxu1 %v4621_v45 }
  0x51   :  { %3459 = vmatprep.subr.bf16.mxu0 %v4625_v46  ;;  %3491 = vmatprep.subr.bf16.mxu1 %v4625_v46 }
  0x53   :  { %4375 = vset.pattern.permute.xlu1 %v4501_v12  ;;  %4380 = vset.pattern.permute.xlu0 %v4506_v50 }
  0x54   :  { %3461 = vmatpush1.bf16.msra.mxu0 %v4629_v51  ;;  %3493 = vmatpush1.bf16.msra.mxu1 %v4629_v51 }
  0x55   :  { %3463 = vmatprep.subr.bf16.mxu0 %v4633_v52  ;;  %3495 = vmatprep.subr.bf16.mxu1 %v4633_v52 }
  0x56   :  { %1387 = vperm.xlu1 %4375, %v4570_v2   ;;  %2137 = vperm.xlu0 %4380, %v4570_v2  }
  0x58   :  { %3465 = vmatpush1.bf16.msra.mxu0 %v4637_v55  ;;  %3497 = vmatpush1.bf16.msra.mxu1 %v4637_v55 }
  0x59   :  { %3498 = vmatprep.subr.bf16.mxu0 %v4495_v56  ;;  %3523 = vmatprep.subr.bf16.mxu1 %v4574_v5 }
  0x5a   :  { %4376 = vset.pattern.permute.xlu1 %v4502_v38  ;;  %4382 = vset.pattern.permute.xlu0 %v4507_v54 }
  0x5b   :  { %1537 = vperm.xlu1 %4376, %v4570_v2  }
  0x5f   :  { %4378 = vset.pattern.permute.xlu1 %v4504_v44 }
  0x60   :  { %1837 = vperm.xlu1 %4378, %v4570_v2  }
  0x64   :  { %4379 = vset.pattern.permute.xlu1 %v4505_v48 }
  0x65   :  { %1987 = vperm.xlu1 %4379, %v4570_v2  }
  0x69   :  { %4381 = vset.pattern.permute.xlu1 %v4507_v54 }
  0x6a   :  { %2287 = vperm.xlu1 %4381, %v4570_v2  }
  0xb8   :  { %v110_v1 = vpop.permute.xlu0 %109  ;;  %v338_v37 = vpop.permute.xlu1 %337 }
  0xb9   :  { %vm111_vm0 = vcmp.eq.s32.totalorder %v110_v1, %v4649_v63  ;;  %vm339_vm3 = vcmp.eq.s32.totalorder %v338_v37, %v4649_v63 }
  0xba   :  { %2572 = vmatmul.mubr.msk.f32.vlgmr.msra.gmra.mrb[0].mxu0 %vm111_vm0, %v4499_v6 }
  0xbb   :  { %3500 = vmatpush3.bf16.msra.mxu0 %v4651_v0  ;;  %2941 = vmatprep.mubr.msk.f32.mxu0 %vm4500_vm1, %v4490_v13 }
  0xbc   :  { %3501 = vmatprep.subr.bf16.mxu0 %v4495_v56 }
  0xbd   :  { %v188_v11 = vpop.permute.xlu0 %187  ;;  %v488_v41 = vpop.permute.xlu1 %487 }
  0xbe   :  { %vm189_vm2 = vcmp.eq.s32.totalorder %v188_v11, %v4649_v63  ;;  %vm489_vm4 = vcmp.eq.s32.totalorder %v488_v41, %v4649_v63 }
  0xbf   :  { %3503 = vmatpush3.bf16.msra.mxu0 %v4656_v7  ;;  %2574 = vmatmul.mubr.msk.f32.vlgmr.msra.gmra.mrb[0].mxu1 %vm189_vm2, %v4499_v6 }
  0xc0   :  { %3525 = vmatpush1.bf16.msra.mxu1 %v4576_v9  ;;  %3504 = vmatprep.subr.bf16.mxu0 %v4495_v56 }
  0xc1   :  { %3527 = vmatprep.subr.bf16.mxu1 %v4581_v14  ;;  %406 = vmatprep.mubr.f32.mxu1 %v4490_v13 }
  0xc2   :  { %v638_v43 = vpop.permute.xlu1 %637  ;;  %v788_v47 = vpop.permute.xlu0 %787 }
  0xc3   :  { %3506 = vmatpush3.bf16.msra.mxu0 %v4667_v15  ;;  %vm639_vm5 = vcmp.eq.s32.totalorder %v638_v43, %v4649_v63  ;;  %vm789_vm6 = vcmp.eq.s32.totalorder %v788_v47, %v4649_v63 }
  0xc4   :  { %3529 = vmatpush1.bf16.msra.mxu1 %v4585_v17  ;;  %3507 = vmatprep.subr.bf16.mxu0 %v4495_v56 }
  0xc5   :  { %3531 = vmatprep.subr.bf16.mxu1 %v4588_v20 }
  0xc7   :  { %3509 = vmatpush3.bf16.msra.mxu0 %v4674_v19 }
  0xc8   :  { %3533 = vmatpush1.bf16.msra.mxu1 %v4595_v25  ;;  %3510 = vmatprep.subr.bf16.mxu0 %v4495_v56 }
  0xc9   :  { %3535 = vmatprep.subr.bf16.mxu1 %v4599_v26  ;;  %v938_v49 = vpop.permute.xlu1 %937  ;;  %v1238_v62 = vpop.permute.xlu0 %1237 }
  0xca   :  { %vm939_vm7 = vcmp.eq.s32.totalorder %v938_v49, %v4649_v63  ;;  %vm1239_vm9 = vcmp.eq.s32.totalorder %v1238_v62, %v4649_v63 }
  0xcb   :  { %3512 = vmatpush3.bf16.msra.mxu0 %v4680_v23 }
  0xcc   :  { %3537 = vmatpush1.bf16.msra.mxu1 %v4605_v33  ;;  %3513 = vmatprep.subr.bf16.mxu0 %v4495_v56 }
  0xcd   :  { %3539 = vmatprep.subr.bf16.mxu1 %v4609_v34 }
  0xce   :  { %v1088_v53 = vpop.permute.xlu1 %1087  ;;  %v1688_v47 = vpop.permute.xlu0 %1687 }
  0xcf   :  { %3515 = vmatpush3.bf16.msra.mxu0 %v4686_v28  ;;  %vm1089_vm8 = vcmp.eq.s32.totalorder %v1088_v53, %v4649_v63  ;;  %vm1689_vm12 = vcmp.eq.s32.totalorder %v1688_v47, %v4649_v63  ;;  %v2438_v47 = vld [vmem:[#allocation7 + $0x18] sm:$0xff] }
  0xd0   :  { %3541 = vmatpush1.bf16.msra.mxu1 %v4613_v39  ;;  %3516 = vmatprep.subr.bf16.mxu0 %v4495_v56 }
  0xd1   :  { %3543 = vmatprep.subr.bf16.mxu1 %v4617_v40 }
  0xd3   :  { %3518 = vmatpush3.bf16.msra.mxu0 %v4692_v31 }
  0xd4   :  { %3545 = vmatpush1.bf16.msra.mxu1 %v4621_v45  ;;  %3519 = vmatprep.subr.bf16.mxu0 %v4495_v56 }
  0xd5   :  { %3547 = vmatprep.subr.bf16.mxu1 %v4625_v46  ;;  %v1388_v12 = vpop.permute.xlu1 %1387 }
  0xd6   :  { %vm1389_vm10 = vcmp.eq.s32.totalorder %v1388_v12, %v4649_v63 }
  0xd7   :  { %3521 = vmatpush3.bf16.msra.mxu0 %v4698_v36 }
  0xd8   :  { %3549 = vmatpush1.bf16.msra.mxu1 %v4629_v51  ;;  %3554 = vmatprep.subr.bf16.mxu0 %v4495_v56 }
  0xd9   :  { %3551 = vmatprep.subr.bf16.mxu1 %v4633_v52 }
  0xda   :  { %2942 = vmatmul.mubr.msk.f32.vlgmr.msra.gmra.mrb[2].mxu0 %vm189_vm2, %v4499_v6  ;;  %v1538_v32 = vpop.permute.xlu1 %1537 }
  0xdb   :  { %3556 = vmatpush3.bf16.msra.mxu0 %v4651_v0  ;;  %2976 = vmatprep.mubr.msk.f32.mxu0 %vm4500_vm1, %v4490_v13  ;;  %vm1539_vm11 = vcmp.eq.s32.totalorder %v1538_v32, %v4649_v63  ;;  %v2435_v32 = vld [vmem:[#allocation7] sm:$0xff] }
  0xdc   :  { %3553 = vmatpush1.bf16.msra.mxu1 %v4637_v55  ;;  %3557 = vmatprep.subr.bf16.mxu0 %v4495_v56 }
  0xdd   :  { %3579 = vmatprep.subr.bf16.mxu1 %v4574_v5 }
  0xdf   :  { %2577 = vmatmul.mubr.msk.f32.vlgmr.msra.gmra.mrb[2].mxu1 %vm339_vm3, %v4499_v6  ;;  %3559 = vmatpush3.bf16.msra.mxu0 %v4656_v7 }
  0xe0   :  { %3581 = vmatpush1.bf16.msra.mxu1 %v4576_v9  ;;  %3560 = vmatprep.subr.bf16.mxu0 %v4495_v56 }
  0xe1   :  { %3583 = vmatprep.subr.bf16.mxu1 %v4581_v14  ;;  %556 = vmatprep.mubr.f32.mxu1 %v4490_v13 }
  0xe3   :  { %3562 = vmatpush3.bf16.msra.mxu0 %v4667_v15 }
  0xe4   :  { %3585 = vmatpush1.bf16.msra.mxu1 %v4585_v17  ;;  %3563 = vmatprep.subr.bf16.mxu0 %v4495_v56 }
  0xe5   :  { %3587 = vmatprep.subr.bf16.mxu1 %v4588_v20 }
  0xe7   :  { %3565 = vmatpush3.bf16.msra.mxu0 %v4674_v19 }
  0xe8   :  { %3589 = vmatpush1.bf16.msra.mxu1 %v4595_v25  ;;  %3566 = vmatprep.subr.bf16.mxu0 %v4495_v56 }
  0xe9   :  { %3591 = vmatprep.subr.bf16.mxu1 %v4599_v26 }
  0xeb   :  { %3568 = vmatpush3.bf16.msra.mxu0 %v4680_v23 }
  0xec   :  { %3593 = vmatpush1.bf16.msra.mxu1 %v4605_v33  ;;  %3569 = vmatprep.subr.bf16.mxu0 %v4495_v56 }
  0xed   :  { %3595 = vmatprep.subr.bf16.mxu1 %v4609_v34 }
  0xef   :  { %3571 = vmatpush3.bf16.msra.mxu0 %v4686_v28 }
  0xf0   :  { %3597 = vmatpush1.bf16.msra.mxu1 %v4613_v39  ;;  %3572 = vmatprep.subr.bf16.mxu0 %v4495_v56 }
  0xf1   :  { %3599 = vmatprep.subr.bf16.mxu1 %v4617_v40 }
  0xf3   :  { %3574 = vmatpush3.bf16.msra.mxu0 %v4692_v31 }
  0xf4   :  { %3601 = vmatpush1.bf16.msra.mxu1 %v4621_v45  ;;  %3575 = vmatprep.subr.bf16.mxu0 %v4495_v56 }
  0xf5   :  { %3603 = vmatprep.subr.bf16.mxu1 %v4625_v46 }
  0xf7   :  { %3577 = vmatpush3.bf16.msra.mxu0 %v4698_v36 }
  0xf8   :  { %3605 = vmatpush1.bf16.msra.mxu1 %v4629_v51  ;;  %3610 = vmatprep.subr.bf16.mxu0 %v4495_v56 }
  0xf9   :  { %3607 = vmatprep.subr.bf16.mxu1 %v4633_v52 }
  0xfa   :  { %2977 = vmatmul.mubr.msk.f32.vlgmr.msra.gmra.mrb[4].mxu0 %vm339_vm3, %v4499_v6 }
  0xfb   :  { %3612 = vmatpush3.bf16.msra.mxu0 %v4651_v0  ;;  %3011 = vmatprep.mubr.msk.f32.mxu0 %vm4500_vm1, %v4490_v13 }
  0xfc   :  { %3609 = vmatpush1.bf16.msra.mxu1 %v4637_v55  ;;  %3613 = vmatprep.subr.bf16.mxu0 %v4495_v56 }
  0xfd   :  { %3635 = vmatprep.subr.bf16.mxu1 %v4574_v5 }
  0xff   :  { %2580 = vmatmul.mubr.msk.f32.vlgmr.msra.gmra.mrb[4].mxu1 %vm489_vm4, %v4499_v6  ;;  %3615 = vmatpush3.bf16.msra.mxu0 %v4656_v7 }
 0x100   :  { %3637 = vmatpush1.bf16.msra.mxu1 %v4576_v9  ;;  %3616 = vmatprep.subr.bf16.mxu0 %v4495_v56 }
 0x101   :  { %3639 = vmatprep.subr.bf16.mxu1 %v4581_v14  ;;  %706 = vmatprep.mubr.f32.mxu1 %v4490_v13 }
 0x103   :  { %3618 = vmatpush3.bf16.msra.mxu0 %v4667_v15 }
 0x104   :  { %3641 = vmatpush1.bf16.msra.mxu1 %v4585_v17  ;;  %3619 = vmatprep.subr.bf16.mxu0 %v4495_v56 }
 0x105   :  { %3643 = vmatprep.subr.bf16.mxu1 %v4588_v20 }
 0x107   :  { %3621 = vmatpush3.bf16.msra.mxu0 %v4674_v19 }
 0x108   :  { %3645 = vmatpush1.bf16.msra.mxu1 %v4595_v25  ;;  %3622 = vmatprep.subr.bf16.mxu0 %v4495_v56 }
 0x109   :  { %3647 = vmatprep.subr.bf16.mxu1 %v4599_v26 }
 0x10b   :  { %3624 = vmatpush3.bf16.msra.mxu0 %v4680_v23 }
 0x10c   :  { %3649 = vmatpush1.bf16.msra.mxu1 %v4605_v33  ;;  %3625 = vmatprep.subr.bf16.mxu0 %v4495_v56 }
 0x10d   :  { %3651 = vmatprep.subr.bf16.mxu1 %v4609_v34 }
 0x10f   :  { %3627 = vmatpush3.bf16.msra.mxu0 %v4686_v28 }
 0x110   :  { %3653 = vmatpush1.bf16.msra.mxu1 %v4613_v39  ;;  %3628 = vmatprep.subr.bf16.mxu0 %v4495_v56 }
 0x111   :  { %3655 = vmatprep.subr.bf16.mxu1 %v4617_v40 }
 0x113   :  { %3630 = vmatpush3.bf16.msra.mxu0 %v4692_v31 }
 0x114   :  { %3657 = vmatpush1.bf16.msra.mxu1 %v4621_v45  ;;  %3631 = vmatprep.subr.bf16.mxu0 %v4495_v56 }
 0x115   :  { %3659 = vmatprep.subr.bf16.mxu1 %v4625_v46 }
 0x117   :  { %3633 = vmatpush3.bf16.msra.mxu0 %v4698_v36 }
 0x118   :  { %3661 = vmatpush1.bf16.msra.mxu1 %v4629_v51  ;;  %3666 = vmatprep.subr.bf16.mxu0 %v4495_v56 }
 0x119   :  { %3663 = vmatprep.subr.bf16.mxu1 %v4633_v52 }
 0x11a   :  { %3012 = vmatmul.mubr.msk.f32.vlgmr.msra.gmra.mrb[6].mxu0 %vm489_vm4, %v4499_v6 }
 0x11b   :  { %3668 = vmatpush3.bf16.msra.mxu0 %v4651_v0  ;;  %3046 = vmatprep.mubr.msk.f32.mxu0 %vm4500_vm1, %v4490_v13 }
 0x11c   :  { %3665 = vmatpush1.bf16.msra.mxu1 %v4637_v55  ;;  %3669 = vmatprep.subr.bf16.mxu0 %v4495_v56 }
 0x11d   :  { %3691 = vmatprep.subr.bf16.mxu1 %v4574_v5 }
 0x11f   :  { %2583 = vmatmul.mubr.msk.f32.vlgmr.msra.gmra.mrb[6].mxu1 %vm639_vm5, %v4499_v6  ;;  %3671 = vmatpush3.bf16.msra.mxu0 %v4656_v7 }
 0x120   :  { %3693 = vmatpush1.bf16.msra.mxu1 %v4576_v9  ;;  %3672 = vmatprep.subr.bf16.mxu0 %v4495_v56 }
 0x121   :  { %3695 = vmatprep.subr.bf16.mxu1 %v4581_v14  ;;  %856 = vmatprep.mubr.f32.mxu1 %v4490_v13 }
 0x123   :  { %3674 = vmatpush3.bf16.msra.mxu0 %v4667_v15 }
 0x124   :  { %3697 = vmatpush1.bf16.msra.mxu1 %v4585_v17  ;;  %3675 = vmatprep.subr.bf16.mxu0 %v4495_v56 }
 0x125   :  { %3699 = vmatprep.subr.bf16.mxu1 %v4588_v20 }
 0x127   :  { %3677 = vmatpush3.bf16.msra.mxu0 %v4674_v19 }
 0x128   :  { %3701 = vmatpush1.bf16.msra.mxu1 %v4595_v25  ;;  %3678 = vmatprep.subr.bf16.mxu0 %v4495_v56 }
 0x129   :  { %3703 = vmatprep.subr.bf16.mxu1 %v4599_v26 }
 0x12b   :  { %3680 = vmatpush3.bf16.msra.mxu0 %v4680_v23 }
 0x12c   :  { %3705 = vmatpush1.bf16.msra.mxu1 %v4605_v33  ;;  %3681 = vmatprep.subr.bf16.mxu0 %v4495_v56 }
 0x12d   :  { %3707 = vmatprep.subr.bf16.mxu1 %v4609_v34 }
 0x12f   :  { %3683 = vmatpush3.bf16.msra.mxu0 %v4686_v28 }
 0x130   :  { %3709 = vmatpush1.bf16.msra.mxu1 %v4613_v39  ;;  %3684 = vmatprep.subr.bf16.mxu0 %v4495_v56 }
 0x131   :  { %3711 = vmatprep.subr.bf16.mxu1 %v4617_v40 }
 0x133   :  { %3686 = vmatpush3.bf16.msra.mxu0 %v4692_v31 }
 0x134   :  { %3713 = vmatpush1.bf16.msra.mxu1 %v4621_v45  ;;  %3687 = vmatprep.subr.bf16.mxu0 %v4495_v56 }
 0x135   :  { %3715 = vmatprep.subr.bf16.mxu1 %v4625_v46 }
 0x137   :  { %3689 = vmatpush3.bf16.msra.mxu0 %v4698_v36 }
 0x138   :  { %3717 = vmatpush1.bf16.msra.mxu1 %v4629_v51  ;;  %3722 = vmatprep.subr.bf16.mxu0 %v4495_v56 }
 0x139   :  { %3719 = vmatprep.subr.bf16.mxu1 %v4633_v52 }
 0x13a   :  { %3047 = vmatmul.mubr.msk.f32.vlgmr.msra.gmra.mrb[8].mxu0 %vm639_vm5, %v4499_v6 }
 0x13b   :  { %3724 = vmatpush3.bf16.msra.mxu0 %v4651_v0  ;;  %3081 = vmatprep.mubr.msk.f32.mxu0 %vm4500_vm1, %v4490_v13 }
 0x13c   :  { %3721 = vmatpush1.bf16.msra.mxu1 %v4637_v55  ;;  %3725 = vmatprep.subr.bf16.mxu0 %v4495_v56 }
 0x13d   :  { %3747 = vmatprep.subr.bf16.mxu1 %v4574_v5 }
 0x13f   :  { %2586 = vmatmul.mubr.msk.f32.vlgmr.msra.gmra.mrb[8].mxu1 %vm789_vm6, %v4499_v6  ;;  %3727 = vmatpush3.bf16.msra.mxu0 %v4656_v7 }
 0x140   :  { %3749 = vmatpush1.bf16.msra.mxu1 %v4576_v9  ;;  %3728 = vmatprep.subr.bf16.mxu0 %v4495_v56 }
 0x141   :  { %3751 = vmatprep.subr.bf16.mxu1 %v4581_v14  ;;  %1006 = vmatprep.mubr.f32.mxu1 %v4490_v13 }
 0x143   :  { %3730 = vmatpush3.bf16.msra.mxu0 %v4667_v15 }
 0x144   :  { %3753 = vmatpush1.bf16.msra.mxu1 %v4585_v17  ;;  %3731 = vmatprep.subr.bf16.mxu0 %v4495_v56 }
 0x145   :  { %3755 = vmatprep.subr.bf16.mxu1 %v4588_v20 }
 0x147   :  { %3733 = vmatpush3.bf16.msra.mxu0 %v4674_v19 }
 0x148   :  { %3757 = vmatpush1.bf16.msra.mxu1 %v4595_v25  ;;  %3734 = vmatprep.subr.bf16.mxu0 %v4495_v56 }
 0x149   :  { %3759 = vmatprep.subr.bf16.mxu1 %v4599_v26 }
 0x14b   :  { %3736 = vmatpush3.bf16.msra.mxu0 %v4680_v23 }
 0x14c   :  { %3761 = vmatpush1.bf16.msra.mxu1 %v4605_v33  ;;  %3737 = vmatprep.subr.bf16.mxu0 %v4495_v56 }
 0x14d   :  { %3763 = vmatprep.subr.bf16.mxu1 %v4609_v34 }
 0x14f   :  { %3739 = vmatpush3.bf16.msra.mxu0 %v4686_v28 }
 0x150   :  { %3765 = vmatpush1.bf16.msra.mxu1 %v4613_v39  ;;  %3740 = vmatprep.subr.bf16.mxu0 %v4495_v56 }
 0x151   :  { %3767 = vmatprep.subr.bf16.mxu1 %v4617_v40 }
 0x153   :  { %3742 = vmatpush3.bf16.msra.mxu0 %v4692_v31 }
 0x154   :  { %3769 = vmatpush1.bf16.msra.mxu1 %v4621_v45  ;;  %3743 = vmatprep.subr.bf16.mxu0 %v4495_v56 }
 0x155   :  { %3771 = vmatprep.subr.bf16.mxu1 %v4625_v46 }
 0x157   :  { %3745 = vmatpush3.bf16.msra.mxu0 %v4698_v36 }
 0x158   :  { %3773 = vmatpush1.bf16.msra.mxu1 %v4629_v51  ;;  %3778 = vmatprep.subr.bf16.mxu0 %v4495_v56 }
 0x159   :  { %3775 = vmatprep.subr.bf16.mxu1 %v4633_v52 }
 0x15a   :  { %3082 = vmatmul.mubr.msk.f32.vlgmr.msra.gmra.mrb[10].mxu0 %vm789_vm6, %v4499_v6 }
 0x15b   :  { %3780 = vmatpush3.bf16.msra.mxu0 %v4651_v0  ;;  %3116 = vmatprep.mubr.msk.f32.mxu0 %vm4500_vm1, %v4490_v13 }
 0x15c   :  { %3777 = vmatpush1.bf16.msra.mxu1 %v4637_v55  ;;  %3781 = vmatprep.subr.bf16.mxu0 %v4495_v56 }
 0x15d   :  { %3803 = vmatprep.subr.bf16.mxu1 %v4574_v5 }
 0x15f   :  { %2589 = vmatmul.mubr.msk.f32.vlgmr.msra.gmra.mrb[10].mxu1 %vm939_vm7, %v4499_v6  ;;  %3783 = vmatpush3.bf16.msra.mxu0 %v4656_v7 }
 0x160   :  { %3805 = vmatpush1.bf16.msra.mxu1 %v4576_v9  ;;  %3784 = vmatprep.subr.bf16.mxu0 %v4495_v56 }
 0x161   :  { %3807 = vmatprep.subr.bf16.mxu1 %v4581_v14  ;;  %1156 = vmatprep.mubr.f32.mxu1 %v4490_v13 }
 0x163   :  { %3786 = vmatpush3.bf16.msra.mxu0 %v4667_v15 }
 0x164   :  { %3809 = vmatpush1.bf16.msra.mxu1 %v4585_v17  ;;  %3787 = vmatprep.subr.bf16.mxu0 %v4495_v56 }
 0x165   :  { %3811 = vmatprep.subr.bf16.mxu1 %v4588_v20 }
 0x167   :  { %3789 = vmatpush3.bf16.msra.mxu0 %v4674_v19 }
 0x168   :  { %3813 = vmatpush1.bf16.msra.mxu1 %v4595_v25  ;;  %3790 = vmatprep.subr.bf16.mxu0 %v4495_v56 }
 0x169   :  { %3815 = vmatprep.subr.bf16.mxu1 %v4599_v26 }
 0x16b   :  { %3792 = vmatpush3.bf16.msra.mxu0 %v4680_v23 }
 0x16c   :  { %3817 = vmatpush1.bf16.msra.mxu1 %v4605_v33  ;;  %3793 = vmatprep.subr.bf16.mxu0 %v4495_v56 }
 0x16d   :  { %3819 = vmatprep.subr.bf16.mxu1 %v4609_v34 }
 0x16f   :  { %3795 = vmatpush3.bf16.msra.mxu0 %v4686_v28 }
 0x170   :  { %3821 = vmatpush1.bf16.msra.mxu1 %v4613_v39  ;;  %3796 = vmatprep.subr.bf16.mxu0 %v4495_v56 }
 0x171   :  { %3823 = vmatprep.subr.bf16.mxu1 %v4617_v40 }
 0x173   :  { %3798 = vmatpush3.bf16.msra.mxu0 %v4692_v31 }
 0x174   :  { %3825 = vmatpush1.bf16.msra.mxu1 %v4621_v45  ;;  %3799 = vmatprep.subr.bf16.mxu0 %v4495_v56 }
 0x175   :  { %3827 = vmatprep.subr.bf16.mxu1 %v4625_v46 }
 0x177   :  { %3801 = vmatpush3.bf16.msra.mxu0 %v4698_v36 }
 0x178   :  { %3829 = vmatpush1.bf16.msra.mxu1 %v4629_v51  ;;  %3834 = vmatprep.subr.bf16.mxu0 %v4495_v56 }
 0x179   :  { %3831 = vmatprep.subr.bf16.mxu1 %v4633_v52 }
 0x17a   :  { %3117 = vmatmul.mubr.msk.f32.vlgmr.msra.gmra.mrb[12].mxu0 %vm939_vm7, %v4499_v6 }
 0x17b   :  { %3836 = vmatpush3.bf16.msra.mxu0 %v4651_v0  ;;  %3151 = vmatprep.mubr.msk.f32.mxu0 %vm4500_vm1, %v4490_v13 }
 0x17c   :  { %3833 = vmatpush1.bf16.msra.mxu1 %v4637_v55  ;;  %3837 = vmatprep.subr.bf16.mxu0 %v4495_v56 }
 0x17d   :  { %3859 = vmatprep.subr.bf16.mxu1 %v4574_v5 }
 0x17f   :  { %2592 = vmatmul.mubr.msk.f32.vlgmr.msra.gmra.mrb[12].mxu1 %vm1089_vm8, %v4499_v6  ;;  %3839 = vmatpush3.bf16.msra.mxu0 %v4656_v7 }
 0x180   :  { %3861 = vmatpush1.bf16.msra.mxu1 %v4576_v9  ;;  %3840 = vmatprep.subr.bf16.mxu0 %v4495_v56 }
 0x181   :  { %3863 = vmatprep.subr.bf16.mxu1 %v4581_v14  ;;  %1306 = vmatprep.mubr.f32.mxu1 %v4490_v13 }
 0x183   :  { %3842 = vmatpush3.bf16.msra.mxu0 %v4667_v15 }
 0x184   :  { %3865 = vmatpush1.bf16.msra.mxu1 %v4585_v17  ;;  %3843 = vmatprep.subr.bf16.mxu0 %v4495_v56 }
 0x185   :  { %3867 = vmatprep.subr.bf16.mxu1 %v4588_v20 }
 0x187   :  { %3845 = vmatpush3.bf16.msra.mxu0 %v4674_v19 }
 0x188   :  { %3869 = vmatpush1.bf16.msra.mxu1 %v4595_v25  ;;  %3846 = vmatprep.subr.bf16.mxu0 %v4495_v56 }
 0x189   :  { %3871 = vmatprep.subr.bf16.mxu1 %v4599_v26 }
 0x18b   :  { %3848 = vmatpush3.bf16.msra.mxu0 %v4680_v23 }
 0x18c   :  { %3873 = vmatpush1.bf16.msra.mxu1 %v4605_v33  ;;  %3849 = vmatprep.subr.bf16.mxu0 %v4495_v56 }
 0x18d   :  { %v180_v2 = vpop.f32.mrb[0].mxu0  ;;  %3875 = vmatprep.subr.bf16.mxu1 %v4609_v34 }
 0x18e   :  { %v182_v57 = vpop.f32.mrb[1].mxu0  ;;  %v185_v58 = vmax.f32 %v180_v2, 0.0 }
 0x18f   :  { %3851 = vmatpush3.bf16.msra.mxu0 %v4686_v28 }
 0x190   :  { %3877 = vmatpush1.bf16.msra.mxu1 %v4613_v39  ;;  %3852 = vmatprep.subr.bf16.mxu0 %v4495_v56 }
 0x191   :  { %3879 = vmatprep.subr.bf16.mxu1 %v4617_v40 }
 0x192   :  { %v258_v59 = vpop.f32.mrb[0].mxu1 }
 0x193   :  { %v4957_v60 = vmax.f32 %v185_v58, %v258_v59  ;;  %3854 = vmatpush3.bf16.msra.mxu0 %v4692_v31  ;;  %v4960_v61 = vpop.f32.mrb[1].mxu1  ;;  %v1838_v58 = vpop.permute.xlu1 %1837 }
 0x194   :  { %3881 = vmatpush1.bf16.msra.mxu1 %v4621_v45  ;;  %3855 = vmatprep.subr.bf16.mxu0 %v4495_v56  ;;  %vm1839_vm13 = vcmp.eq.s32.totalorder %v1838_v58, %v4649_v63  ;;  %v2458_v58 = vld [vmem:[#allocation7 + $0xb8] sm:$0xff] }
 0x195   :  { %3883 = vmatprep.subr.bf16.mxu1 %v4625_v46 }
 0x197   :  { %3857 = vmatpush3.bf16.msra.mxu0 %v4698_v36 }
 0x198   :  { %3885 = vmatpush1.bf16.msra.mxu1 %v4629_v51  ;;  %3890 = vmatprep.subr.bf16.mxu0 %v4495_v56 }
 0x199   :  { %3887 = vmatprep.subr.bf16.mxu1 %v4633_v52 }
 0x19a   :  { %3152 = vmatmul.mubr.msk.f32.vlgmr.msra.gmra.mrb[14].mxu0 %vm1089_vm8, %v4499_v6 }
 0x19b   :  { %3892 = vmatpush3.bf16.msra.mxu0 %v4651_v0  ;;  %3186 = vmatprep.mubr.msk.f32.mxu0 %vm4500_vm1, %v4490_v13 }
 0x19c   :  { %3889 = vmatpush1.bf16.msra.mxu1 %v4637_v55  ;;  %3893 = vmatprep.subr.bf16.mxu0 %v4495_v56 }
 0x19d   :  { %3915 = vmatprep.subr.bf16.mxu1 %v4574_v5 }
 0x19f   :  { %2595 = vmatmul.mubr.msk.f32.vlgmr.msra.gmra.mrb[14].mxu1 %vm1239_vm9, %v4499_v6  ;;  %3895 = vmatpush3.bf16.msra.mxu0 %v4656_v7 }
 0x1a0   :  { %3917 = vmatpush1.bf16.msra.mxu1 %v4576_v9  ;;  %3896 = vmatprep.subr.bf16.mxu0 %v4495_v56 }
 0x1a1   :  { %3919 = vmatprep.subr.bf16.mxu1 %v4581_v14  ;;  %1456 = vmatprep.mubr.f32.mxu1 %v4490_v13 }
 0x1a3   :  { %3898 = vmatpush3.bf16.msra.mxu0 %v4667_v15 }
 0x1a4   :  { %3921 = vmatpush1.bf16.msra.mxu1 %v4585_v17  ;;  %3899 = vmatprep.subr.bf16.mxu0 %v4495_v56 }
 0x1a5   :  { %3923 = vmatprep.subr.bf16.mxu1 %v4588_v20 }
 0x1a7   :  { %3901 = vmatpush3.bf16.msra.mxu0 %v4674_v19 }
 0x1a8   :  { %3925 = vmatpush1.bf16.msra.mxu1 %v4595_v25  ;;  %3902 = vmatprep.subr.bf16.mxu0 %v4495_v56 }
 0x1a9   :  { %3927 = vmatprep.subr.bf16.mxu1 %v4599_v26 }
 0x1ab   :  { %3904 = vmatpush3.bf16.msra.mxu0 %v4680_v23 }
 0x1ac   :  { %3929 = vmatpush1.bf16.msra.mxu1 %v4605_v33  ;;  %3905 = vmatprep.subr.bf16.mxu0 %v4495_v56 }
 0x1ad   :  { %v329_v1 = vpop.f32.mrb[2].mxu0  ;;  %3931 = vmatprep.subr.bf16.mxu1 %v4609_v34 }
 0x1ae   :  { %v334_v3 = vadd.f32 %v329_v1, %v182_v57  ;;  %v2943_v4 = vpop.f32.mrb[3].mxu0 }
 0x1af   :  { %3907 = vmatpush3.bf16.msra.mxu0 %v4686_v28 }
 0x1b0   :  { %3933 = vmatpush1.bf16.msra.mxu1 %v4613_v39  ;;  %3908 = vmatprep.subr.bf16.mxu0 %v4495_v56  ;;  %v335_v18 = vmax.f32 %v334_v3, 0.0 }
 0x1b1   :  { %3935 = vmatprep.subr.bf16.mxu1 %v4617_v40 }
 0x1b2   :  { %v408_v8 = vpop.f32.mrb[2].mxu1 }
 0x1b3   :  { %v483_v10 = vmax.f32 %v4957_v60, %v408_v8  ;;  %3910 = vmatpush3.bf16.msra.mxu0 %v4692_v31  ;;  %v5005_v11 = vpop.f32.mrb[3].mxu1  ;;  %v1988_v8 = vpop.permute.xlu1 %1987 }
 0x1b4   :  { %3937 = vmatpush1.bf16.msra.mxu1 %v4621_v45  ;;  %3911 = vmatprep.subr.bf16.mxu0 %v4495_v56  ;;  %vm1989_vm14 = vcmp.eq.s32.totalorder %v1988_v8, %v4649_v63 }
 0x1b5   :  { %3939 = vmatprep.subr.bf16.mxu1 %v4625_v46 }
 0x1b7   :  { %3913 = vmatpush3.bf16.msra.mxu0 %v4698_v36 }
 0x1b8   :  { %3941 = vmatpush1.bf16.msra.mxu1 %v4629_v51  ;;  %3946 = vmatprep.subr.bf16.mxu0 %v4495_v56 }
 0x1b9   :  { %3943 = vmatprep.subr.bf16.mxu1 %v4633_v52 }
 0x1ba   :  { %3187 = vmatmul.mubr.msk.f32.vlgmr.msra.gmra.mrb[16].mxu0 %vm1239_vm9, %v4499_v6 }
 0x1bb   :  { %3948 = vmatpush3.bf16.msra.mxu0 %v4651_v0  ;;  %3221 = vmatprep.mubr.msk.f32.mxu0 %vm4500_vm1, %v4490_v13 }
 0x1bc   :  { %3945 = vmatpush1.bf16.msra.mxu1 %v4637_v55  ;;  %3949 = vmatprep.subr.bf16.mxu0 %v4495_v56 }
 0x1bd   :  { %3971 = vmatprep.subr.bf16.mxu1 %v4574_v5 }
 0x1bf   :  { %2598 = vmatmul.mubr.msk.f32.vlgmr.msra.gmra.mrb[16].mxu1 %vm1389_vm10, %v4499_v6  ;;  %3951 = vmatpush3.bf16.msra.mxu0 %v4656_v7 }
 0x1c0   :  { %3973 = vmatpush1.bf16.msra.mxu1 %v4576_v9  ;;  %3952 = vmatprep.subr.bf16.mxu0 %v4495_v56 }
 0x1c1   :  { %3975 = vmatprep.subr.bf16.mxu1 %v4581_v14  ;;  %1606 = vmatprep.mubr.f32.mxu1 %v4490_v13 }
 0x1c3   :  { %3954 = vmatpush3.bf16.msra.mxu0 %v4667_v15 }
 0x1c4   :  { %3977 = vmatpush1.bf16.msra.mxu1 %v4585_v17  ;;  %3955 = vmatprep.subr.bf16.mxu0 %v4495_v56 }
 0x1c5   :  { %3979 = vmatprep.subr.bf16.mxu1 %v4588_v20 }
 0x1c7   :  { %3957 = vmatpush3.bf16.msra.mxu0 %v4674_v19 }
 0x1c8   :  { %3981 = vmatpush1.bf16.msra.mxu1 %v4595_v25  ;;  %3958 = vmatprep.subr.bf16.mxu0 %v4495_v56 }
 0x1c9   :  { %3983 = vmatprep.subr.bf16.mxu1 %v4599_v26 }
 0x1cb   :  { %3960 = vmatpush3.bf16.msra.mxu0 %v4680_v23 }
 0x1cc   :  { %3985 = vmatpush1.bf16.msra.mxu1 %v4605_v33  ;;  %3961 = vmatprep.subr.bf16.mxu0 %v4495_v56 }
 0x1cd   :  { %v479_v16 = vpop.f32.mrb[4].mxu0  ;;  %3987 = vmatprep.subr.bf16.mxu1 %v4609_v34 }
 0x1ce   :  { %v484_v21 = vadd.f32 %v479_v16, %v4960_v61  ;;  %v2978_v22 = vpop.f32.mrb[5].mxu0 }
 0x1cf   :  { %3963 = vmatpush3.bf16.msra.mxu0 %v4686_v28 }
 0x1d0   :  { %v5046_v24 = vmax.f32 %v335_v18, %v484_v21  ;;  %3989 = vmatpush1.bf16.msra.mxu1 %v4613_v39  ;;  %3964 = vmatprep.subr.bf16.mxu0 %v4495_v56 }
 0x1d1   :  { %3991 = vmatprep.subr.bf16.mxu1 %v4617_v40 }
 0x1d2   :  { %v558_v27 = vpop.f32.mrb[4].mxu1 }
 0x1d3   :  { %v5051_v29 = vmax.f32 %v483_v10, %v558_v27  ;;  %3966 = vmatpush3.bf16.msra.mxu0 %v4692_v31  ;;  %v5054_v30 = vpop.f32.mrb[5].mxu1 }
 0x1d4   :  { %3993 = vmatpush1.bf16.msra.mxu1 %v4621_v45  ;;  %3967 = vmatprep.subr.bf16.mxu0 %v4495_v56 }
 0x1d5   :  { %3995 = vmatprep.subr.bf16.mxu1 %v4625_v46 }
 0x1d7   :  { %3969 = vmatpush3.bf16.msra.mxu0 %v4698_v36 }
 0x1d8   :  { %3997 = vmatpush1.bf16.msra.mxu1 %v4629_v51  ;;  %4002 = vmatprep.subr.bf16.mxu0 %v4495_v56 }
 0x1d9   :  { %3999 = vmatprep.subr.bf16.mxu1 %v4633_v52 }
 0x1da   :  { %3222 = vmatmul.mubr.msk.f32.vlgmr.msra.gmra.mrb[18].mxu0 %vm1389_vm10, %v4499_v6 }
 0x1db   :  { %4004 = vmatpush3.bf16.msra.mxu0 %v4651_v0  ;;  %3256 = vmatprep.mubr.msk.f32.mxu0 %vm4500_vm1, %v4490_v13 }
 0x1dc   :  { %4001 = vmatpush1.bf16.msra.mxu1 %v4637_v55  ;;  %4005 = vmatprep.subr.bf16.mxu0 %v4495_v56 }
 0x1dd   :  { %4027 = vmatprep.subr.bf16.mxu1 %v4574_v5 }
 0x1df   :  { %2601 = vmatmul.mubr.msk.f32.vlgmr.msra.gmra.mrb[18].mxu1 %vm1539_vm11, %v4499_v6  ;;  %4007 = vmatpush3.bf16.msra.mxu0 %v4656_v7 }
 0x1e0   :  { %4029 = vmatpush1.bf16.msra.mxu1 %v4576_v9  ;;  %4008 = vmatprep.subr.bf16.mxu0 %v4495_v56 }
 0x1e1   :  { %4031 = vmatprep.subr.bf16.mxu1 %v4581_v14  ;;  %1756 = vmatprep.mubr.f32.mxu1 %v4490_v13 }
 0x1e3   :  { %4010 = vmatpush3.bf16.msra.mxu0 %v4667_v15 }
 0x1e4   :  { %4033 = vmatpush1.bf16.msra.mxu1 %v4585_v17  ;;  %4011 = vmatprep.subr.bf16.mxu0 %v4495_v56 }
 0x1e5   :  { %4035 = vmatprep.subr.bf16.mxu1 %v4588_v20 }
 0x1e7   :  { %4013 = vmatpush3.bf16.msra.mxu0 %v4674_v19 }
 0x1e8   :  { %4037 = vmatpush1.bf16.msra.mxu1 %v4595_v25  ;;  %4014 = vmatprep.subr.bf16.mxu0 %v4495_v56 }
 0x1e9   :  { %4039 = vmatprep.subr.bf16.mxu1 %v4599_v26 }
 0x1eb   :  { %4016 = vmatpush3.bf16.msra.mxu0 %v4680_v23 }
 0x1ec   :  { %4041 = vmatpush1.bf16.msra.mxu1 %v4605_v33  ;;  %4017 = vmatprep.subr.bf16.mxu0 %v4495_v56 }
 0x1ed   :  { %v629_v35 = vpop.f32.mrb[6].mxu0  ;;  %4043 = vmatprep.subr.bf16.mxu1 %v4609_v34 }
 0x1ee   :  { %v634_v37 = vadd.f32 %v629_v35, %v5005_v11  ;;  %v3013_v38 = vpop.f32.mrb[7].mxu0  ;;  %v2436_v35 = vld [vmem:[#allocation7 + $0x8] sm:$0xff] }
 0x1ef   :  { %4019 = vmatpush3.bf16.msra.mxu0 %v4686_v28 }
 0x1f0   :  { %v635_v41 = vmax.f32 %v5046_v24, %v634_v37  ;;  %4045 = vmatpush1.bf16.msra.mxu1 %v4613_v39  ;;  %4020 = vmatprep.subr.bf16.mxu0 %v4495_v56  ;;  %v2138_v24 = vpop.permute.xlu0 %2137 }
 0x1f1   :  { %4047 = vmatprep.subr.bf16.mxu1 %v4617_v40  ;;  %vm2139_vm15 = vcmp.eq.s32.totalorder %v2138_v24, %v4649_v63  ;;  %v2446_v24 = vld [vmem:[#allocation7 + $0x58] sm:$0xff] }
 0x1f2   :  { %v708_v42 = vpop.f32.mrb[6].mxu1 }
 0x1f3   :  { %v783_v43 = vmax.f32 %v5051_v29, %v708_v42  ;;  %4022 = vmatpush3.bf16.msra.mxu0 %v4692_v31  ;;  %v5101_v44 = vpop.f32.mrb[7].mxu1  ;;  %v2454_v42 = vld [vmem:[#allocation7 + $0x98] sm:$0xff] }
 0x1f4   :  { %4049 = vmatpush1.bf16.msra.mxu1 %v4621_v45  ;;  %4023 = vmatprep.subr.bf16.mxu0 %v4495_v56 }
 0x1f5   :  { %4051 = vmatprep.subr.bf16.mxu1 %v4625_v46 }
 0x1f7   :  { %4025 = vmatpush3.bf16.msra.mxu0 %v4698_v36 }
 0x1f8   :  { %4053 = vmatpush1.bf16.msra.mxu1 %v4629_v51  ;;  %4058 = vmatprep.subr.bf16.mxu0 %v4495_v56 }
 0x1f9   :  { %4055 = vmatprep.subr.bf16.mxu1 %v4633_v52 }
 0x1fa   :  { %3257 = vmatmul.mubr.msk.f32.vlgmr.msra.gmra.mrb[20].mxu0 %vm1539_vm11, %v4499_v6 }
 0x1fb   :  { %4060 = vmatpush3.bf16.msra.mxu0 %v4651_v0  ;;  %3291 = vmatprep.mubr.msk.f32.mxu0 %vm4500_vm1, %v4490_v13 }
 0x1fc   :  { %4057 = vmatpush1.bf16.msra.mxu1 %v4637_v55  ;;  %4061 = vmatprep.subr.bf16.mxu0 %v4495_v56 }
 0x1fd   :  { %4083 = vmatprep.subr.bf16.mxu1 %v4574_v5 }
 0x1ff   :  { %2604 = vmatmul.mubr.msk.f32.vlgmr.msra.gmra.mrb[20].mxu1 %vm1689_vm12, %v4499_v6  ;;  %4063 = vmatpush3.bf16.msra.mxu0 %v4656_v7 }
 0x200   :  { %4085 = vmatpush1.bf16.msra.mxu1 %v4576_v9  ;;  %4064 = vmatprep.subr.bf16.mxu0 %v4495_v56 }
 0x201   :  { %4087 = vmatprep.subr.bf16.mxu1 %v4581_v14  ;;  %1906 = vmatprep.mubr.f32.mxu1 %v4490_v13 }
 0x203   :  { %4066 = vmatpush3.bf16.msra.mxu0 %v4667_v15 }
 0x204   :  { %4089 = vmatpush1.bf16.msra.mxu1 %v4585_v17  ;;  %4067 = vmatprep.subr.bf16.mxu0 %v4495_v56 }
 0x205   :  { %4091 = vmatprep.subr.bf16.mxu1 %v4588_v20 }
 0x207   :  { %4069 = vmatpush3.bf16.msra.mxu0 %v4674_v19 }
 0x208   :  { %4093 = vmatpush1.bf16.msra.mxu1 %v4595_v25  ;;  %4070 = vmatprep.subr.bf16.mxu0 %v4495_v56 }
 0x209   :  { %4095 = vmatprep.subr.bf16.mxu1 %v4599_v26 }
 0x20b   :  { %4072 = vmatpush3.bf16.msra.mxu0 %v4680_v23 }
 0x20c   :  { %4097 = vmatpush1.bf16.msra.mxu1 %v4605_v33  ;;  %4073 = vmatprep.subr.bf16.mxu0 %v4495_v56 }
 0x20d   :  { %v779_v48 = vpop.f32.mrb[8].mxu0  ;;  %4099 = vmatprep.subr.bf16.mxu1 %v4609_v34 }
 0x20e   :  { %v784_v49 = vadd.f32 %v779_v48, %v5054_v30  ;;  %v3048_v50 = vpop.f32.mrb[9].mxu0  ;;  %v2452_v30 = vld [vmem:[#allocation7 + $0x88] sm:$0xff]  ;;  %v2455_v48 = vld [vmem:[#allocation7 + $0xa0] sm:$0xff] }
 0x20f   :  { %4075 = vmatpush3.bf16.msra.mxu0 %v4686_v28 }
 0x210   :  { %v5142_v53 = vmax.f32 %v635_v41, %v784_v49  ;;  %4101 = vmatpush1.bf16.msra.mxu1 %v4613_v39  ;;  %4076 = vmatprep.subr.bf16.mxu0 %v4495_v56  ;;  %v2453_v41 = vld [vmem:[#allocation7 + $0x90] sm:$0xff]  ;;  %v2456_v49 = vld [vmem:[#allocation7 + $0xa8] sm:$0xff] }
 0x211   :  { %4103 = vmatprep.subr.bf16.mxu1 %v4617_v40 }
 0x212   :  { %v858_v54 = vpop.f32.mrb[8].mxu1 }
 0x213   :  { %v5147_v2 = vmax.f32 %v783_v43, %v858_v54  ;;  %4078 = vmatpush3.bf16.msra.mxu0 %v4692_v31  ;;  %v5150_v57 = vpop.f32.mrb[9].mxu1  ;;  %v2437_v43 = vld [vmem:[#allocation7 + $0x10] sm:$0xff]  ;;  %v2439_v54 = vld [vmem:[#allocation7 + $0x20] sm:$0xff] }
 0x214   :  { %4105 = vmatpush1.bf16.msra.mxu1 %v4621_v45  ;;  %4079 = vmatprep.subr.bf16.mxu0 %v4495_v56  ;;  %v4312_v50 = vpack.c.bf16 %v2438_v47, %v2437_v43 }
 0x215   :  { %4107 = vmatprep.subr.bf16.mxu1 %v4625_v46 }
 0x217   :  { %4081 = vmatpush3.bf16.msra.mxu0 %v4698_v36 }
 0x218   :  { %4109 = vmatpush1.bf16.msra.mxu1 %v4629_v51  ;;  %4114 = vmatprep.subr.bf16.mxu0 %v4495_v56 }
 0x219   :  { %4111 = vmatprep.subr.bf16.mxu1 %v4633_v52 }
 0x21a   :  { %3292 = vmatmul.mubr.msk.f32.vlgmr.msra.gmra.mrb[22].mxu0 %vm1689_vm12, %v4499_v6 }
 0x21b   :  { %4116 = vmatpush3.bf16.msra.mxu0 %v4651_v0  ;;  %3326 = vmatprep.mubr.msk.f32.mxu0 %vm4500_vm1, %v4490_v13 }
 0x21c   :  { %4113 = vmatpush1.bf16.msra.mxu1 %v4637_v55  ;;  %4117 = vmatprep.subr.bf16.mxu0 %v4495_v56 }
 0x21d   :  { %4139 = vmatprep.subr.bf16.mxu1 %v4574_v5 }
 0x21f   :  { %2607 = vmatmul.mubr.msk.f32.vlgmr.msra.gmra.mrb[22].mxu1 %vm1839_vm13, %v4499_v6  ;;  %4119 = vmatpush3.bf16.msra.mxu0 %v4656_v7 }
 0x220   :  { %4141 = vmatpush1.bf16.msra.mxu1 %v4576_v9  ;;  %4120 = vmatprep.subr.bf16.mxu0 %v4495_v56 }
 0x221   :  { %4143 = vmatprep.subr.bf16.mxu1 %v4581_v14  ;;  %2056 = vmatprep.mubr.f32.mxu1 %v4490_v13 }
 0x223   :  { %4122 = vmatpush3.bf16.msra.mxu0 %v4667_v15 }
 0x224   :  { %4145 = vmatpush1.bf16.msra.mxu1 %v4585_v17  ;;  %4123 = vmatprep.subr.bf16.mxu0 %v4495_v56 }
 0x225   :  { %4147 = vmatprep.subr.bf16.mxu1 %v4588_v20 }
 0x227   :  { %4125 = vmatpush3.bf16.msra.mxu0 %v4674_v19 }
 0x228   :  { %4149 = vmatpush1.bf16.msra.mxu1 %v4595_v25  ;;  %4126 = vmatprep.subr.bf16.mxu0 %v4495_v56 }
 0x229   :  { %4151 = vmatprep.subr.bf16.mxu1 %v4599_v26 }
 0x22b   :  { %4128 = vmatpush3.bf16.msra.mxu0 %v4680_v23 }
 0x22c   :  { %4153 = vmatpush1.bf16.msra.mxu1 %v4605_v33  ;;  %4129 = vmatprep.subr.bf16.mxu0 %v4495_v56 }
 0x22d   :  { %v929_v59 = vpop.f32.mrb[10].mxu0  ;;  %4155 = vmatprep.subr.bf16.mxu1 %v4609_v34 }
 0x22e   :  { %v934_v60 = vadd.f32 %v929_v59, %v5101_v44  ;;  %v3083_v61 = vpop.f32.mrb[11].mxu0  ;;  %v4310_v44 = vpack.c.bf16 %v2454_v42, %v2453_v41 }
 0x22f   :  { %4131 = vmatpush3.bf16.msra.mxu0 %v4686_v28  ;;  %v2441_v61 = vld [vmem:[#allocation7 + $0x30] sm:$0xff] }
 0x230   :  { %v935_v62 = vmax.f32 %v5142_v53, %v934_v60  ;;  %4157 = vmatpush1.bf16.msra.mxu1 %v4613_v39  ;;  %4132 = vmatprep.subr.bf16.mxu0 %v4495_v56  ;;  %v4314_v53 = vpack.c.bf16 %v2456_v49, %v2455_v48 }
 0x231   :  { %4159 = vmatprep.subr.bf16.mxu1 %v4617_v40 }
 0x232   :  { %v1008_v1 = vpop.f32.mrb[10].mxu1 }
 0x233   :  { %v1083_v3 = vmax.f32 %v5147_v2, %v1008_v1  ;;  %4134 = vmatpush3.bf16.msra.mxu0 %v4692_v31  ;;  %v5197_v4 = vpop.f32.mrb[11].mxu1  ;;  %v2440_v2 = vld [vmem:[#allocation7 + $0x28] sm:$0xff]  ;;  %v2459_v1 = vld [vmem:[#allocation7 + $0xc0] sm:$0xff] }
 0x234   :  { %4161 = vmatpush1.bf16.msra.mxu1 %v4621_v45  ;;  %4135 = vmatprep.subr.bf16.mxu0 %v4495_v56  ;;  %v4316_v59 = vpack.c.bf16 %v2440_v2, %v2439_v54 }
 0x235   :  { %4163 = vmatprep.subr.bf16.mxu1 %v4625_v46 }
 0x237   :  { %4137 = vmatpush3.bf16.msra.mxu0 %v4698_v36 }
 0x238   :  { %4165 = vmatpush1.bf16.msra.mxu1 %v4629_v51  ;;  %4170 = vmatprep.subr.bf16.mxu0 %v4495_v56 }
 0x239   :  { %4167 = vmatprep.subr.bf16.mxu1 %v4633_v52 }
 0x23a   :  { %3327 = vmatmul.mubr.msk.f32.vlgmr.msra.gmra.mrb[24].mxu0 %vm1839_vm13, %v4499_v6 }
 0x23b   :  { %4172 = vmatpush3.bf16.msra.mxu0 %v4651_v0  ;;  %3361 = vmatprep.mubr.msk.f32.mxu0 %vm4500_vm1, %v4490_v13 }
 0x23c   :  { %4169 = vmatpush1.bf16.msra.mxu1 %v4637_v55  ;;  %4173 = vmatprep.subr.bf16.mxu0 %v4495_v56 }
 0x23d   :  { %4195 = vmatprep.subr.bf16.mxu1 %v4574_v5 }
 0x23f   :  { %2610 = vmatmul.mubr.msk.f32.vlgmr.msra.gmra.mrb[24].mxu1 %vm1989_vm14, %v4499_v6  ;;  %4175 = vmatpush3.bf16.msra.mxu0 %v4656_v7 }
 0x240   :  { %4197 = vmatpush1.bf16.msra.mxu1 %v4576_v9  ;;  %4176 = vmatprep.subr.bf16.mxu0 %v4495_v56 }
 0x241   :  { %4199 = vmatprep.subr.bf16.mxu1 %v4581_v14  ;;  %2206 = vmatprep.mubr.f32.mxu1 %v4490_v13 }
 0x243   :  { %4178 = vmatpush3.bf16.msra.mxu0 %v4667_v15 }
 0x244   :  { %4201 = vmatpush1.bf16.msra.mxu1 %v4585_v17  ;;  %4179 = vmatprep.subr.bf16.mxu0 %v4495_v56 }
 0x245   :  { %4203 = vmatprep.subr.bf16.mxu1 %v4588_v20 }
 0x247   :  { %4181 = vmatpush3.bf16.msra.mxu0 %v4674_v19 }
 0x248   :  { %4205 = vmatpush1.bf16.msra.mxu1 %v4595_v25  ;;  %4182 = vmatprep.subr.bf16.mxu0 %v4495_v56 }
 0x249   :  { %4207 = vmatprep.subr.bf16.mxu1 %v4599_v26 }
 0x24b   :  { %4184 = vmatpush3.bf16.msra.mxu0 %v4680_v23 }
 0x24c   :  { %4209 = vmatpush1.bf16.msra.mxu1 %v4605_v33  ;;  %4185 = vmatprep.subr.bf16.mxu0 %v4495_v56 }
 0x24d   :  { %v1079_v10 = vpop.f32.mrb[12].mxu0  ;;  %4211 = vmatprep.subr.bf16.mxu1 %v4609_v34 }
 0x24e   :  { %v1084_v11 = vadd.f32 %v1079_v10, %v5150_v57  ;;  %v3118_v12 = vpop.f32.mrb[13].mxu0  ;;  %v2457_v57 = vld [vmem:[#allocation7 + $0xb0] sm:$0xff]  ;;  %v2443_v10 = vld [vmem:[#allocation7 + $0x40] sm:$0xff] }
 0x24f   :  { %4187 = vmatpush3.bf16.msra.mxu0 %v4686_v28  ;;  %v4318_v60 = vpack.c.bf16 %v2458_v58, %v2457_v57  ;;  %v2461_v12 = vld [vmem:[#allocation7 + $0xd0] sm:$0xff]  ;;  %v2618_v58 = vld [vmem:[%s5359_s3] ss:$0 sm:$0xff] }
 0x250   :  { %v5238_v16 = vmax.f32 %v935_v62, %v1084_v11  ;;  %4213 = vmatpush1.bf16.msra.mxu1 %v4613_v39  ;;  %4188 = vmatprep.subr.bf16.mxu0 %v4495_v56  ;;  %v2442_v62 = vld [vmem:[#allocation7 + $0x38] sm:$0xff]  ;;  %v2444_v11 = vld [vmem:[#allocation7 + $0x48] sm:$0xff] }
 0x251   :  { %4215 = vmatprep.subr.bf16.mxu1 %v4617_v40 }
 0x252   :  { %v1158_v18 = vpop.f32.mrb[12].mxu1 }
 0x253   :  { %v5243_v21 = vmax.f32 %v1083_v3, %v1158_v18  ;;  %4190 = vmatpush3.bf16.msra.mxu0 %v4692_v31  ;;  %v5246_v22 = vpop.f32.mrb[13].mxu1  ;;  %v2460_v3 = vld [vmem:[#allocation7 + $0xc8] sm:$0xff]  ;;  %v4324_v18 = vpack.c.bf16 %v2444_v11, %v2443_v10 }
 0x254   :  { %4217 = vmatpush1.bf16.msra.mxu1 %v4621_v45  ;;  %4191 = vmatprep.subr.bf16.mxu0 %v4495_v56  ;;  %v4322_v8 = vpack.c.bf16 %v2460_v3, %v2459_v1 }
 0x255   :  { %4219 = vmatprep.subr.bf16.mxu1 %v4625_v46 }
 0x257   :  { %4193 = vmatpush3.bf16.msra.mxu0 %v4698_v36 }
 0x258   :  { %4221 = vmatpush1.bf16.msra.mxu1 %v4629_v51  ;;  %4226 = vmatprep.subr.bf16.mxu0 %v4495_v56 }
 0x259   :  { %4223 = vmatprep.subr.bf16.mxu1 %v4633_v52 }
 0x25a   :  { %3362 = vmatmul.mubr.msk.f32.vlgmr.msra.gmra.mrb[26].mxu0 %vm1989_vm14, %v4499_v6 }
 0x25b   :  { %4228 = vmatpush3.bf16.msra.mxu0 %v4651_v0  ;;  %3396 = vmatprep.mubr.msk.f32.mxu0 %vm4500_vm1, %v4490_v13 }
 0x25c   :  { %4225 = vmatpush1.bf16.msra.mxu1 %v4637_v55  ;;  %4229 = vmatprep.subr.bf16.mxu0 %v4495_v56 }
 0x25d   :  { %4251 = vmatprep.subr.bf16.mxu1 %v4574_v5 }
 0x25f   :  { %2613 = vmatmul.mubr.msk.f32.vlgmr.msra.gmra.mrb[26].mxu1 %vm2139_vm15, %v4499_v6  ;;  %4231 = vmatpush3.bf16.msra.mxu0 %v4656_v7 }
 0x260   :  { %4253 = vmatpush1.bf16.msra.mxu1 %v4576_v9  ;;  %4232 = vmatprep.subr.bf16.mxu0 %v4495_v56 }
 0x261   :  { %4255 = vmatprep.subr.bf16.mxu1 %v4581_v14  ;;  %2356 = vmatprep.mubr.f32.mxu1 %v4490_v13 }
 0x263   :  { %4234 = vmatpush3.bf16.msra.mxu0 %v4667_v15 }
 0x264   :  { %4257 = vmatpush1.bf16.msra.mxu1 %v4585_v17  ;;  %4235 = vmatprep.subr.bf16.mxu0 %v4495_v56 }
 0x265   :  { %4259 = vmatprep.subr.bf16.mxu1 %v4588_v20 }
 0x267   :  { %4237 = vmatpush3.bf16.msra.mxu0 %v4674_v19 }
 0x268   :  { %4261 = vmatpush1.bf16.msra.mxu1 %v4595_v25  ;;  %4238 = vmatprep.subr.bf16.mxu0 %v4495_v56 }
 0x269   :  { %4263 = vmatprep.subr.bf16.mxu1 %v4599_v26 }
 0x26b   :  { %4240 = vmatpush3.bf16.msra.mxu0 %v4680_v23 }
 0x26c   :  { %4265 = vmatpush1.bf16.msra.mxu1 %v4605_v33  ;;  %4241 = vmatprep.subr.bf16.mxu0 %v4495_v56  ;;  %v2288_v33 = vpop.permute.xlu1 %2287 }
 0x26d   :  { %v1229_v5 = vpop.f32.mrb[14].mxu0  ;;  %4267 = vmatprep.subr.bf16.mxu1 %v4609_v34  ;;  %vm2289_vm0 = vcmp.eq.s32.totalorder %v2288_v33, %v4649_v63  ;;  %v2465_v33 = vld [vmem:[#allocation7 + $0xf0] sm:$0xff] }
 0x26e   :  { %v1234_v9 = vadd.f32 %v1229_v5, %v5197_v4  ;;  %v3153_v14 = vpop.f32.mrb[15].mxu0  ;;  %v4320_v4 = vpack.c.bf16 %v2442_v62, %v2441_v61  ;;  %v2463_v5 = vld [vmem:[#allocation7 + $0xe0] sm:$0xff] }
 0x26f   :  { %4243 = vmatpush3.bf16.msra.mxu0 %v4686_v28 }
 0x270   :  { %v1235_v17 = vmax.f32 %v5238_v16, %v1234_v9  ;;  %4269 = vmatpush1.bf16.msra.mxu1 %v4613_v39  ;;  %4244 = vmatprep.subr.bf16.mxu0 %v4495_v56  ;;  %v2462_v16 = vld [vmem:[#allocation7 + $0xd8] sm:$0xff]  ;;  %v2464_v9 = vld [vmem:[#allocation7 + $0xe8] sm:$0xff] }
 0x271   :  { %4271 = vmatprep.subr.bf16.mxu1 %v4617_v40 }
 0x272   :  { %v1308_v20 = vpop.f32.mrb[14].mxu1 }
 0x273   :  { %v1383_v25 = vmax.f32 %v5243_v21, %v1308_v20  ;;  %4246 = vmatpush3.bf16.msra.mxu0 %v4692_v31  ;;  %v1310_v26 = vpop.f32.mrb[15].mxu1  ;;  %v4326_v21 = vpack.c.bf16 %v2462_v16, %v2461_v12  ;;  %v2447_v20 = vld [vmem:[#allocation7 + $0x60] sm:$0xff] }
 0x274   :  { %4273 = vmatpush1.bf16.msra.mxu1 %v4621_v45  ;;  %4247 = vmatprep.subr.bf16.mxu0 %v4495_v56 }
 0x275   :  { %4275 = vmatprep.subr.bf16.mxu1 %v4625_v46 }
 0x277   :  { %4249 = vmatpush3.bf16.msra.mxu0 %v4698_v36 }
 0x278   :  { %4277 = vmatpush1.bf16.msra.mxu1 %v4629_v51  ;;  %4282 = vmatprep.subr.bf16.mxu0 %v4495_v56 }
 0x279   :  { %4279 = vmatprep.subr.bf16.mxu1 %v4633_v52 }
 0x27a   :  { %3397 = vmatmul.mubr.msk.f32.vlgmr.msra.gmra.mrb[28].mxu0 %vm2139_vm15, %v4499_v6 }
 0x27b   :  { %4284 = vmatpush3.bf16.msra.mxu0 %v4651_v0  ;;  %3431 = vmatprep.mubr.msk.f32.mxu0 %vm4500_vm1, %v4490_v13 }
 0x27c   :  { %4281 = vmatpush1.bf16.msra.mxu1 %v4637_v55  ;;  %4285 = vmatprep.subr.bf16.mxu0 %v4495_v56 }
 0x27f   :  { %2616 = vmatmul.mubr.msk.f32.vlgmr.msra.gmra.mrb[28].mxu1 %vm2289_vm0, %v4499_v6  ;;  %4287 = vmatpush3.bf16.msra.mxu0 %v4656_v7 }
 0x280   :  { %4288 = vmatprep.subr.bf16.mxu0 %v4495_v56 }
 0x283   :  { %4290 = vmatpush3.bf16.msra.mxu0 %v4667_v15 }
 0x284   :  { %4291 = vmatprep.subr.bf16.mxu0 %v4495_v56 }
 0x287   :  { %4293 = vmatpush3.bf16.msra.mxu0 %v4674_v19 }
 0x288   :  { %4294 = vmatprep.subr.bf16.mxu0 %v4495_v56 }
 0x28b   :  { %4296 = vmatpush3.bf16.msra.mxu0 %v4680_v23 }
 0x28c   :  { %4297 = vmatprep.subr.bf16.mxu0 %v4495_v56 }
 0x28d   :  { %v1379_v13 = vpop.f32.mrb[16].mxu0 }
 0x28e   :  { %v1384_v34 = vadd.f32 %v1379_v13, %v5246_v22  ;;  %v3188_v39 = vpop.f32.mrb[17].mxu0  ;;  %v2445_v22 = vld [vmem:[#allocation7 + $0x50] sm:$0xff]  ;;  %v2466_v13 = vld [vmem:[#allocation7 + $0xf8] sm:$0xff] }
 0x28f   :  { %4299 = vmatpush3.bf16.msra.mxu0 %v4686_v28  ;;  %v4328_v14 = vpack.c.bf16 %v2446_v24, %v2445_v22  ;;  %v4334_v39 = vpack.c.bf16 %v2466_v13, %v2465_v33 }
 0x290   :  { %v1385_v40 = vmax.f32 %v1235_v17, %v1384_v34  ;;  %4300 = vmatprep.subr.bf16.mxu0 %v4495_v56  ;;  %v4330_v17 = vpack.c.bf16 %v2464_v9, %v2463_v5 }
 0x292   :  { %v1458_v45 = vpop.f32.mrb[16].mxu1 }
 0x293   :  { %v1533_v46 = vmax.f32 %v1383_v25, %v1458_v45  ;;  %4302 = vmatpush3.bf16.msra.mxu0 %v4692_v31  ;;  %v1460_v51 = vpop.f32.mrb[17].mxu1  ;;  %v2448_v25 = vld [vmem:[#allocation7 + $0x68] sm:$0xff]  ;;  %v2450_v45 = vld [vmem:[#allocation7 + $0x78] sm:$0xff] }
 0x294   :  { %4303 = vmatprep.subr.bf16.mxu0 %v4495_v56  ;;  %v2451_v56 = vld [vmem:[#allocation7 + $0x80] sm:$0xff] }
 0x297   :  { %4305 = vmatpush3.bf16.msra.mxu0 %v4698_v36  ;;  %v4306_v36 = vpack.c.bf16 %v2452_v30, %v2451_v56 }
 0x299   :  { %4307 = vmatprep.subr.bf16.mxu1 %v4306_v36 }
 0x29a   :  { %3432 = vmatmul.mubr.msk.f32.vlgmr.msra.gmra.mrb[30].mxu0 %vm2289_vm0, %v4499_v6  ;;  %v4308_v6 = vpack.c.bf16 %v2436_v35, %v2435_v32 }
 0x29c   :  { %4309 = vmatpush3.bf16.msra.mxu1 %v4308_v6 }
 0x29d   :  { %4311 = vmatprep.subr.bf16.mxu1 %v4310_v44 }
 0x2a0   :  { %4313 = vmatpush3.bf16.msra.mxu1 %v4312_v50 }
 0x2a1   :  { %4315 = vmatprep.subr.bf16.mxu1 %v4314_v53 }
 0x2a4   :  { %4317 = vmatpush3.bf16.msra.mxu1 %v4316_v59 }
 0x2a5   :  { %4319 = vmatprep.subr.bf16.mxu1 %v4318_v60 }
 0x2a8   :  { %4321 = vmatpush3.bf16.msra.mxu1 %v4320_v4 }
 0x2a9   :  { %4323 = vmatprep.subr.bf16.mxu1 %v4322_v8 }
 0x2ac   :  { %4325 = vmatpush3.bf16.msra.mxu1 %v4324_v18 }
 0x2ad   :  { %v1529_v52 = vpop.f32.mrb[18].mxu0  ;;  %4327 = vmatprep.subr.bf16.mxu1 %v4326_v21 }
 0x2ae   :  { %v1534_v55 = vadd.f32 %v1529_v52, %v1310_v26  ;;  %v3223_v0 = vpop.f32.mrb[19].mxu0  ;;  %v4332_v26 = vpack.c.bf16 %v2448_v25, %v2447_v20 }
 0x2b0   :  { %v1535_v7 = vmax.f32 %v1385_v40, %v1534_v55  ;;  %4329 = vmatpush3.bf16.msra.mxu1 %v4328_v14  ;;  %v2449_v40 = vld [vmem:[#allocation7 + $0x70] sm:$0xff] }
 0x2b1   :  { %4331 = vmatprep.subr.bf16.mxu1 %v4330_v17  ;;  %v4336_v52 = vpack.c.bf16 %v2450_v45, %v2449_v40 }
 0x2b2   :  { %v1608_v15 = vpop.f32.mrb[18].mxu1 }
 0x2b3   :  { %v1683_v19 = vmax.f32 %v1533_v46, %v1608_v15  ;;  %v5329_v23 = vpop.f32.mrb[19].mxu1 }
 0x2b4   :  { %4333 = vmatpush3.bf16.msra.mxu1 %v4332_v26 }
 0x2b5   :  { %4335 = vmatprep.subr.bf16.mxu1 %v4334_v39 }
 0x2b8   :  { %4337 = vmatpush3.bf16.msra.mxu1 %v4336_v52 }
 0x2cd   :  { %v1679_v28 = vpop.f32.mrb[20].mxu0 }
 0x2ce   :  { %v1684_v27 = vadd.f32 %v1679_v28, %v1460_v51  ;;  %v3258_v31 = vpop.f32.mrb[21].mxu0 }
 0x2d0   :  { %v5331_v29 = vmax.f32 %v1535_v7, %v1684_v27 }
 0x2d2   :  { %v1758_v63 = vpop.f32.mrb[20].mxu1 }
 0x2d3   :  { %v5333_v37 = vmax.f32 %v1683_v19, %v1758_v63  ;;  %v5335_v38 = vpop.f32.mrb[21].mxu1 }
 0x2ed   :  { %v1829_v34 = vpop.f32.mrb[22].mxu0 }
 0x2ee   :  { %v1834_v46 = vadd.f32 %v1829_v34, %v5329_v23  ;;  %v3293_v51 = vpop.f32.mrb[23].mxu0 }
 0x2f0   :  { %v1835_v55 = vmax.f32 %v5331_v29, %v1834_v46 }
 0x2f2   :  { %v1908_v0 = vpop.f32.mrb[22].mxu1 }
 0x2f3   :  { %v1983_v7 = vmax.f32 %v5333_v37, %v1908_v0  ;;  %v1910_v15 = vpop.f32.mrb[23].mxu1 }
 0x30d   :  { %v1979_v19 = vpop.f32.mrb[24].mxu0 }
 0x30e   :  { %v1984_v28 = vadd.f32 %v1979_v19, %v5335_v38  ;;  %v3328_v27 = vpop.f32.mrb[25].mxu0 }
 0x310   :  { %v1985_v31 = vmax.f32 %v1835_v55, %v1984_v28 }
 0x312   :  { %v2058_v56 = vpop.f32.mrb[24].mxu1 }
 0x313   :  { %v2133_v30 = vmax.f32 %v1983_v7, %v2058_v56  ;;  %v2060_v36 = vpop.f32.mrb[25].mxu1 }
 0x32d   :  { %v2129_v32 = vpop.f32.mrb[26].mxu0 }
 0x32e   :  { %v2134_v23 = vadd.f32 %v2129_v32, %v1910_v15  ;;  %v3363_v35 = vpop.f32.mrb[27].mxu0 }
 0x330   :  { %v2135_v63 = vmax.f32 %v1985_v31, %v2134_v23 }
 0x332   :  { %v2208_v6 = vpop.f32.mrb[26].mxu1 }
 0x333   :  { %v2283_v41 = vmax.f32 %v2133_v30, %v2208_v6  ;;  %v2210_v29 = vpop.f32.mrb[27].mxu1 }
 0x34d   :  { %v2279_v42 = vpop.f32.mrb[28].mxu0 }
 0x34e   :  { %v2284_v43 = vadd.f32 %v2279_v42, %v2060_v36  ;;  %v3398_v44 = vpop.f32.mrb[29].mxu0 }
 0x350   :  { %v2285_v37 = vmax.f32 %v2135_v63, %v2284_v43 }
 0x352   :  { %v2358_v47 = vpop.f32.mrb[28].mxu1 }
 0x353   :  { %v2432_v48 = vmax.f32 %v2283_v41, %v2358_v47  ;;  %v2360_v49 = vpop.f32.mrb[29].mxu1 }
 0x36d   :  { %v2428_v38 = vpop.f32.mrb[30].mxu0 }
 0x36e   :  { %v2433_v50 = vadd.f32 %v2428_v38, %v2210_v29  ;;  %v3433_v53 = vpop.f32.mrb[31].mxu0 }
 0x370   :  { %v2434_v54 = vmax.f32 %v2285_v37, %v2433_v50 }
 0x372   :  { %2538 = vmatprep.mubr.f32.mxu1 %v2434_v54 }
 0x373   :  { %2539 = vmatmul.mubr.f32.vlgmr.msra.gmra.mrb[30].mxu1 %v2432_v48 }
 0x446   :  { %v2906_v2 = vpop.f32.mrb[30].mxu1 }
 0x447   :  { %v2907_v57 = vpop.f32.mrb[31].mxu1 }
 0x448   :  { %v2908_v59 = vadd.f32 %v2907_v57, %v2906_v2 }
 0x44a   :  { %v2541_v60 = vadd.f32 %v2908_v59, %v2618_v58 }
 0x44c   :  { %2544 = vmax.xlane.f32.xlu1 %v2541_v60 }
 0x4d9   :  { %v2545_v61 = vpop.xlane.xlu1 %2544 }
 0x4da   :  { %v2546_v62 = vsub.f32 %v2541_v60, %v2545_v61 }
 0x4dc   :  { %v2547_v1 = vmul.f32 1.442695, %v2546_v62 }
 0x4de   :  { %4383 = vpow2.f32 %v2547_v1 }
 0x4e8   :  { %v4384_v3 = vpop.eup %4383 }
 0x4e9   :  { %2549 = vadd.xlane.f32.xlu0 %v4384_v3 }
 0x576   :  { %v2550_v4 = vpop.xlane.xlu0 %2549 }
 0x577   :  { %4385 = vlog2.f32 %v2550_v4 }
 0x581   :  { %v4386_v8 = vpop.eup %4385 }
 0x582   :  { %v2552_v10 = vmul.f32 0.6931472, %v4386_v8 }
 0x584   :  { %v2553_v11 = vsub.f32 %v2546_v62, %v2552_v10 }
 0x586   :  { %2554 = vst [vmem:[#allocation8] sm:$0xff] %v2553_v11 }
 0x587   :  { %4464 = shalt.err (!%p4461_p0)
}
 0x588   :  { %s4465_s6 = scalar_lea.hbm %s5360_s4, 128 }
 0x589   :  { %p4466_p1 = scmp.ne.s32.totalorder %s5360_s4, %s4465_s6  ;;  %p4469_p2 = scmp.lt.u32.totalorder %s4465_s6, %s5360_s4 }
 0x58b   :  { %p4471_p3 = pnand %p4469_p2, %p4466_p1 }
 0x58d   :  { %4474 = shalt.err (!%p4471_p3)
}
 0x58e   :  { %2564 = dma.vmem_to_hbm [thread:$0]  %s2562_s29, 128, %s5360_s4, [#allocation4]  }
 0x58f   :  { %4479 = dma.done.wait [#allocation4], 128  }
 0x590   :  { %4480 = vsyncadd [#allocation4], 4294967168 }
 0x591   :  { %2568 = vsyncpa [#allocation3], 1 }
 0x592   :  { %2569 = vsyncpa [#allocation6], 1 }
 0x593   :  { %2570 = vsyncpa [#allocation4], 1 }

</bundles_post_ra>
